<compile_context>
chip_gen: v7x
topology: tpu7x:2x2x1
jax: 0.10.0
libtpu: 0.0.40
codegen_flags: <defaults>
</compile_context>

<pallas_src>
import functools

import numpy as np
import jax
import jax.numpy as jnp
from jax.experimental import pallas as pl
from jax.experimental.pallas import tpu as pltpu

EPS = 1e-3
D_PAD = 128    # lane-padded feature width
H_PAD = 128    # lane-padded hidden width (also gives MXU a saner K/N)


def _made_masks(d, h):
    """Standard MADE degree masks for one hidden layer."""
    deg_in = np.arange(1, d + 1)                      # (D,)
    deg_h = (np.arange(h) % max(1, d - 1)) + 1        # (H,)
    deg_out = np.arange(1, d + 1)                     # (D,)
    mask1 = (deg_h[:, None] >= deg_in[None, :]).astype(np.float32)  # (H, D): hidden<-input
    mask2 = (deg_out[:, None] > deg_h[None, :]).astype(np.float32)  # (D, H): output<-hidden
    return mask1, mask2


def ar_affine_kernel(x_ref, w1_ref, w2_ref, out_ref, *, num_features):
    """One batch tile of the autoregressive affine forward.

    x_ref   : (TB, D_PAD)  padded inputs; lane `num_features` is the constant 1.0
              that folds the layer-1 bias into W1_full. Lanes [0:D) are raw inputs
              (may contain NaN; only the MADE-net path cleans them).
    w1_ref  : (D_PAD, H_PAD)   masked w1 with b1 folded in (plus the ones-unit hook).
    w2_ref  : (H_PAD, 2*D_PAD) fused [scale | shift] heads with b2s/b2t folded in.
    out_ref : (TB, D_PAD)  lanes [0:D) = outputs, lane D = logabsdet, rest 0.
    """
    x = x_ref[...]                                    # (TB, D_PAD), raw (NaNs propagate)

    # torch.nan_to_num(inputs) before feeding the autoregressive net.
    xc = jnp.nan_to_num(x)

    # --- MADE hidden layer (bias folded into W1 via the constant-1 input lane) ---
    h = jnp.maximum(
        jnp.dot(xc, w1_ref[...], preferred_element_type=jnp.float32), 0.0)   # (TB, H_PAD)

    # --- fused output heads: [unconstrained_scale | shift] in a single matmul ---
    y = jnp.dot(h, w2_ref[...], preferred_element_type=jnp.float32)          # (TB, 2*D_PAD)
    d_pad = out_ref.shape[-1]
    uns = y[:, :d_pad]                                # (TB, D_PAD)
    shift = y[:, d_pad:]                              # (TB, D_PAD)

    # --- elementwise affine forward (uses raw x on purpose: NaNs flow to outputs) ---
    scale = jax.nn.sigmoid(uns + 2.0) + EPS
    out_aff = scale * x + shift                       # (TB, D_PAD)

    lane = jax.lax.broadcasted_iota(jnp.int32, out_aff.shape, 1)
    valid = lane < num_features
    lad = jnp.sum(jnp.where(valid, jnp.log(scale), 0.0),
                  axis=-1, keepdims=True)             # (TB, 1)

    # Pack outputs + logabsdet into one lane-dense slab (single unmasked store).
    out_ref[...] = jnp.where(valid, out_aff,
                             jnp.where(lane == num_features, lad, 0.0))


def autoregressive_transform_forward(x, w1m, b1, w2s_m, b2s, w2t_m, b2t, *, tb=256):
    """x: (B, D) float32 -> (outputs (B, D), logabsdet (B,)).

    w1m   : (D, H)  mask-applied layer-1 weight (for x @ w1m)
    b1    : (H,)
    w2s_m : (H, D)  mask-applied scale-head weight
    b2s   : (D,)
    w2t_m : (H, D)  mask-applied shift-head weight
    b2t   : (D,)
    """
    B, D = x.shape
    H = w1m.shape[1]
    assert D < D_PAD and H < H_PAD, "need one spare lane / hidden unit for bias folding"

    # --- fuse all parameters into two zero-padded, lane-dense slabs ---
    w1_full = jnp.zeros((D_PAD, H_PAD), jnp.float32)
    w1_full = w1_full.at[:D, :H].set(w1m)
    w1_full = w1_full.at[D, :H].set(b1)          # bias row, hit by the ones lane of x
    w1_full = w1_full.at[D, H].set(1.0)          # hidden unit H becomes relu(1) == 1

    w2_full = jnp.zeros((H_PAD, 2 * D_PAD), jnp.float32)
    w2_full = w2_full.at[:H, :D].set(w2s_m)
    w2_full = w2_full.at[H, :D].set(b2s)         # scale-head bias via hidden unit H
    w2_full = w2_full.at[:H, D_PAD:D_PAD + D].set(w2t_m)
    w2_full = w2_full.at[H, D_PAD:D_PAD + D].set(b2t)   # shift-head bias

    # --- batch tiling: pad B up to a multiple of the tile and grid over it ---
    tb = int(min(tb, ((B + 7) // 8) * 8))        # don't over-tile tiny batches
    n_blocks = pl.cdiv(B, tb)
    b_pad = n_blocks * tb

    xp = jnp.zeros((b_pad, D_PAD), jnp.float32)
    xp = xp.at[:B, :D].set(x)
    xp = xp.at[:, D].set(1.0)                    # constant-1 lane -> layer-1 bias

    kernel = functools.partial(ar_affine_kernel, num_features=D)

    slab = pl.pallas_call(
        kernel,
        out_shape=jax.ShapeDtypeStruct((b_pad, D_PAD), jnp.float32),
        grid=(n_blocks,),
        in_specs=[
            pl.BlockSpec((tb, D_PAD), lambda i: (i, 0)),          # x tile
            pl.BlockSpec((D_PAD, H_PAD), lambda i: (0, 0)),       # W1 (VMEM-resident)
            pl.BlockSpec((H_PAD, 2 * D_PAD), lambda i: (0, 0)),   # W2 (VMEM-resident)
        ],
        out_specs=pl.BlockSpec((tb, D_PAD), lambda i: (i, 0)),
        compiler_params=pltpu.CompilerParams(
            dimension_semantics=("parallel",)),    # shard batch blocks across TCs (v7x)
    )(xp, w1_full, w2_full)

    outputs = slab[:B, :D]
    logabsdet = slab[:B, D]
    return outputs, logabsdet


def _reference(x, w1m, b1, w2s_m, b2s, w2t_m, b2t):
    xc = jnp.nan_to_num(x)
    h = jnp.maximum(xc @ w1m + b1[None, :], 0.0)
    uns = h @ w2s_m + b2s[None, :]
    shift = h @ w2t_m + b2t[None, :]
    scale = jax.nn.sigmoid(uns + 2.0) + EPS
    return scale * x + shift, jnp.sum(jnp.log(scale), axis=-1)


if __name__ == "__main__":
    key = jax.random.PRNGKey(0)
    kx, k1, kb1, k2s, kb2s, k2t, kb2t = jax.random.split(key, 7)

    B, D, H = 512, 8, 32      # batch, features, hidden width of the MADE net
    x = jax.random.normal(kx, (B, D), dtype=jnp.float32)

    # Deterministic parameter init (masked MADE weights).
    mask1, mask2 = _made_masks(D, H)                  # (H, D), (D, H)
    w1 = 0.1 * jax.random.normal(k1, (H, D), dtype=jnp.float32)
    b1 = 0.1 * jax.random.normal(kb1, (H,), dtype=jnp.float32)
    w2s = 0.1 * jax.random.normal(k2s, (D, H), dtype=jnp.float32)
    b2s = 0.1 * jax.random.normal(kb2s, (D,), dtype=jnp.float32)
    w2t = 0.1 * jax.random.normal(k2t, (D, H), dtype=jnp.float32)
    b2t = 0.1 * jax.random.normal(kb2t, (D,), dtype=jnp.float32)

    # Pre-apply autoregressive masks and transpose so the kernel does x @ W.
    w1m = (w1 * jnp.asarray(mask1)).T                 # (D, H)
    w2s_m = (w2s * jnp.asarray(mask2)).T              # (H, D)
    w2t_m = (w2t * jnp.asarray(mask2)).T              # (H, D)

    outputs, logabsdet = autoregressive_transform_forward(
        x, w1m, b1, w2s_m, b2s, w2t_m, b2t, tb=256)
    jax.block_until_ready((outputs, logabsdet))

    ref_out, ref_lad = _reference(x, w1m, b1, w2s_m, b2s, w2t_m, b2t)
    assert outputs.shape == (B, D) and logabsdet.shape == (B,)
    assert jnp.allclose(outputs, ref_out, atol=1e-5, rtol=1e-5)
    assert jnp.allclose(logabsdet, ref_lad, atol=1e-5, rtol=1e-5)

    print("KERNEL_OK")
</pallas_src>

<mosaic_0001>
module attributes {stable_mosaic.version = 11 : i64} {
  func.func @ar_affine_kernel(%arg0: i32, %arg1: memref<256x128xf32, #tpu.memory_space<vmem>>, %arg2: memref<128x128xf32, #tpu.memory_space<vmem>>, %arg3: memref<128x256xf32, #tpu.memory_space<vmem>>, %arg4: memref<256x128xf32, #tpu.memory_space<vmem>>) attributes {dimension_semantics = [#tpu.dimension_semantics<parallel>], iteration_bounds = array<i64: 2>, scalar_prefetch = 0 : i64, scratch_operands = 0 : i64, tpu.core_type = #tpu.core_type<tc>, window_params = [{transform_indices = @transform_0, window_bounds = array<i64: 256, 128>}, {pipeline_mode = #tpu.pipeline_mode<synchronous>, transform_indices = @transform_1, window_bounds = array<i64: 128, 128>}, {pipeline_mode = #tpu.pipeline_mode<synchronous>, transform_indices = @transform_2, window_bounds = array<i64: 128, 256>}, {transform_indices = @transform_3, window_bounds = array<i64: 256, 128>}]} {
    %c0 = arith.constant 0 : index
    %c0_0 = arith.constant 0 : index
    %0 = vector.load %arg1[%c0, %c0_0] : memref<256x128xf32, #tpu.memory_space<vmem>>, vector<256x128xf32>
    %1 = arith.cmpf one, %0, %0 : vector<256x128xf32>
    %cst = arith.constant 0.000000e+00 : f32
    %2 = vector.broadcast %cst : f32 to vector<256x128xf32>
    %3 = arith.select %1, %2, %0 : vector<256x128xi1>, vector<256x128xf32>
    %cst_1 = arith.constant 0x7F800000 : f32
    %4 = vector.broadcast %cst_1 : f32 to vector<256x128xf32>
    %5 = arith.cmpf oeq, %3, %4 : vector<256x128xf32>
    %cst_2 = arith.constant 3.40282347E+38 : f32
    %6 = vector.broadcast %cst_2 : f32 to vector<256x128xf32>
    %7 = arith.select %5, %6, %3 : vector<256x128xi1>, vector<256x128xf32>
    %cst_3 = arith.constant 0xFF800000 : f32
    %8 = vector.broadcast %cst_3 : f32 to vector<256x128xf32>
    %9 = arith.cmpf oeq, %7, %8 : vector<256x128xf32>
    %cst_4 = arith.constant -3.40282347E+38 : f32
    %10 = vector.broadcast %cst_4 : f32 to vector<256x128xf32>
    %11 = arith.select %9, %10, %7 : vector<256x128xi1>, vector<256x128xf32>
    %c0_5 = arith.constant 0 : index
    %c0_6 = arith.constant 0 : index
    %12 = vector.load %arg2[%c0_5, %c0_6] : memref<128x128xf32, #tpu.memory_space<vmem>>, vector<128x128xf32>
    %cst_7 = arith.constant dense<0.000000e+00> : vector<256x128xf32>
    %13 = tpu.matmul %11, %12, %cst_7 {dimension_numbers = #tpu.dot_dimension_numbers<[1], [0], [0], [1], [0, 0, 1, 1], [], []>} : vector<256x128xf32>, vector<128x128xf32>, vector<256x128xf32> -> vector<256x128xf32>
    %cst_8 = arith.constant 0.000000e+00 : f32
    %14 = vector.broadcast %cst_8 : f32 to vector<256x128xf32>
    %15 = arith.maximumf %13, %14 : vector<256x128xf32>
    %c0_9 = arith.constant 0 : index
    %c0_10 = arith.constant 0 : index
    %16 = vector.load %arg3[%c0_9, %c0_10] : memref<128x256xf32, #tpu.memory_space<vmem>>, vector<128x256xf32>
    %cst_11 = arith.constant dense<0.000000e+00> : vector<256x256xf32>
    %17 = tpu.matmul %15, %16, %cst_11 {dimension_numbers = #tpu.dot_dimension_numbers<[1], [0], [0], [1], [0, 0, 1, 1], [], []>} : vector<256x128xf32>, vector<128x256xf32>, vector<256x256xf32> -> vector<256x256xf32>
    %18 = vector.extract_strided_slice %17 {offsets = [0, 0], sizes = [256, 128], strides = [1, 1]} : vector<256x256xf32> to vector<256x128xf32>
    %19 = vector.extract_strided_slice %17 {offsets = [0, 128], sizes = [256, 128], strides = [1, 1]} : vector<256x256xf32> to vector<256x128xf32>
    %cst_12 = arith.constant 2.000000e+00 : f32
    %20 = vector.broadcast %cst_12 : f32 to vector<256x128xf32>
    %21 = arith.addf %18, %20 : vector<256x128xf32>
    %22 = arith.negf %21 : vector<256x128xf32>
    %23 = math.exp %22 : vector<256x128xf32>
    %cst_13 = arith.constant 1.000000e+00 : f32
    %24 = vector.broadcast %cst_13 : f32 to vector<256x128xf32>
    %25 = arith.addf %24, %23 : vector<256x128xf32>
    %26 = arith.divf %24, %25 : vector<256x128xf32>
    %cst_14 = arith.constant 1.000000e-03 : f32
    %27 = vector.broadcast %cst_14 : f32 to vector<256x128xf32>
    %28 = arith.addf %26, %27 : vector<256x128xf32>
    %29 = arith.mulf %28, %0 : vector<256x128xf32>
    %30 = arith.addf %29, %19 : vector<256x128xf32>
    %31 = tpu.iota {dimensions = array<i32: 1>} : vector<256x128xi32>
    %c8_i32 = arith.constant 8 : i32
    %32 = vector.broadcast %c8_i32 : i32 to vector<256x128xi32>
    %33 = arith.cmpi slt, %31, %32 : vector<256x128xi32>
    %34 = math.log %28 : vector<256x128xf32>
    %cst_15 = arith.constant 0.000000e+00 : f32
    %35 = vector.broadcast %cst_15 : f32 to vector<256x128xf32>
    %36 = arith.select %33, %34, %35 : vector<256x128xi1>, vector<256x128xf32>
    %cst_16 = arith.constant dense<0.000000e+00> : vector<256xf32>
    %37 = vector.multi_reduction <add>, %36, %cst_16 [1] : vector<256x128xf32> to vector<256xf32>
    %38 = vector.shape_cast %37 : vector<256xf32> to vector<256x1xf32>
    %c8_i32_17 = arith.constant 8 : i32
    %39 = vector.broadcast %c8_i32_17 : i32 to vector<256x128xi32>
    %40 = arith.cmpi eq, %31, %39 : vector<256x128xi32>
    %cst_18 = arith.constant 0.000000e+00 : f32
    %41 = vector.shape_cast %38 : vector<256x1xf32> to vector<256x1xf32>
    %42 = vector.broadcast %41 : vector<256x1xf32> to vector<256x128xf32>
    %43 = vector.broadcast %cst_18 : f32 to vector<256x128xf32>
    %44 = arith.select %40, %42, %43 : vector<256x128xi1>, vector<256x128xf32>
    %45 = arith.select %33, %30, %44 : vector<256x128xi1>, vector<256x128xf32>
    %c0_19 = arith.constant 0 : index
    %c0_20 = arith.constant 0 : index
    %46 = vector.load %arg4[%c0_19, %c0_20] : memref<256x128xf32, #tpu.memory_space<vmem>>, vector<256x128xf32>
    tpu.vector_store %arg4[%c0_19, %c0_20], %45 {strides = array<i32>} : memref<256x128xf32, #tpu.memory_space<vmem>>, vector<256x128xf32>,
    return
  }
  func.func @transform_0(%arg0: i32) -> (i32, i32) {
    %c0_i32 = arith.constant 0 : i32
    %c0_i32_0 = arith.constant 0 : i32
    return %arg0, %c0_i32 : i32, i32
  }
  func.func @transform_1(%arg0: i32) -> (i32, i32) {
    %c0_i32 = arith.constant 0 : i32
    %c0_i32_0 = arith.constant 0 : i32
    %c0_i32_1 = arith.constant 0 : i32
    return %c0_i32, %c0_i32_0 : i32, i32
  }
  func.func @transform_2(%arg0: i32) -> (i32, i32) {
    %c0_i32 = arith.constant 0 : i32
    %c0_i32_0 = arith.constant 0 : i32
    %c0_i32_1 = arith.constant 0 : i32
    return %c0_i32, %c0_i32_0 : i32, i32
  }
  func.func @transform_3(%arg0: i32) -> (i32, i32) {
    %c0_i32 = arith.constant 0 : i32
    %c0_i32_0 = arith.constant 0 : i32
    return %arg0, %c0_i32 : i32, i32
  }
}

</mosaic_0001>

<bundles_post_ra>
// kernel: tpu_custom_call.1
= control target key start
LH: loop header
LB: loop body
LE: loop exit
PB: predicated region body
PF: predicated region fallthrough
CT: control target
= control target key end

     0   :  { %8 = vsyncpa [#allocation3], 0  ;;  %s3242_s0 = inlined_call_operand.hbm [shape: f32[512,128], index: 0, kind: input, shape index: {}]   ;;  %s3243_s1 = inlined_call_operand.hbm [shape: f32[128,128], index: 1, kind: input, shape index: {}]   ;;  %s3244_s2 = inlined_call_operand.hbm [shape: f32[128,256], index: 2, kind: input, shape index: {}]   ;;  %s3245_s3 = inlined_call_operand.hbm [shape: f32[512,128], index: 3, kind: output, shape index: {}]  }
   0x1   :  { %10 = vsyncpa [#allocation3 + $0x1], 0 }
   0x2   :  { %11 = vsyncpa [#allocation6], 0 }
   0x3   :  { %12 = vsyncpa [#allocation4], 0 }
   0x4   :  { %14 = vsyncpa [#allocation4 + $0x1], 0  ;;  %s2439_s12 = smov 0   ;;  %s2441_s13 = smov 0  }
   0x5   :  { %s2443_s14 = smov 0   ;;  %s2445_s15 = smov 0  }
   0x6 LB: > { %s2460_s16 = sadd.s32 4294967295, %s2406_s15   ;;  %s1692_s17 = sadd.s32 4294967294, %s2406_s15   ;;  %s2406_s15 = sphi %s2445_s15, %s3265_s15   ;;  %s2402_s14 = sphi %s2443_s14, %s3264_s14   ;;  %s2398_s13 = sphi %s2441_s13, %s3263_s13   ;;  %s2394_s12 = sphi %s2439_s12, %s3262_s12  }
   0x7   : > { %p40_p0 = scmp.ne.s32.totalorder %s2398_s13, %s2394_s12  ;;  %p3246_p1 = scmp.eq.s32.totalorder %s2460_s16, 0 }
   0x8   : > { %p112_p3 = scmp.eq.s32.totalorder %s1692_s17, 1  ;;  %p1693_p5 = scmp.ge.s32.totalorder %s2406_s15, 1 }
   0x9   : > { %p2469_p4 = por %p3246_p1, %p40_p0  ;;  %p119_p7 = scmp.lt.s32.totalorder %s2406_s15, 3 }
   0xa   : > { %p2474_p6 = por %p112_p3, %p40_p0  ;;  %s2408_s21 = smov [#allocation5]  }
   0xb   : > { %s3249_s18 = scalar_select %p2469_p4, 1, 0 }
   0xc   : > { %s3250_s19 = scalar_select %p2474_p6, 1, 0 }
   0xd   : > { %p2479_p8 = pnand %p1693_p5, %p119_p7  ;;  %s131_s22 = sshll.u32 %s2408_s21, 4  ;;  %s2483_s22 = int_to_ptr.vmem [resolvable:$true] %s131_s22 }
   0xe   : > { %s2409_s24 = smov [#allocation7]   ;;  %s2250_s28 = scalar_lea.hbm %s3243_s1, 2048 }
   0xf   : > { %p1964_p9 = pneg %p2479_p8  ;;  %s144_s25 = sshll.u32 %s2409_s24, 4  ;;  %s2494_s25 = int_to_ptr.vmem [resolvable:$true] %s144_s25 }
  0x10   : > { %p2251_p12 = scmp.ne.s32.totalorder %s3243_s1, %s2250_s28  ;;  %p2257_p5 = scmp.lt.u32.totalorder %s2250_s28, %s3243_s1 }
  0x11   : > { %p2490_p11 = pnand %p1964_p9, %p3246_p1 }
  0x13   : > { %p2252_p13 = pneg %p2490_p11 }
  0x15   : > { %p2253_p0 = pnand %p2252_p13, %p2251_p12 }
  0x17   : > { %p2254_p3 = pneg %p2253_p0 }
  0x19   : > { %p2259_p7 = pnand %p2257_p5, %p2254_p3 }
  0x1b   : > { %2262 = shalt.err (!%p2259_p7)
}
  0x1c   : > { %s2263_s6 = scalar_lea.vmem %s2483_s22, 2048  ;;  %p2271_p2 = scmp.lt.s32.totalorder %s2483_s22, %s2483_s22 }
  0x1d   : > { %p2264_p9 = scmp.ne.s32.totalorder %s2483_s22, %s2263_s6  ;;  %p2272_p12 = scmp.lt.s32.totalorder %s2263_s6, %s2263_s6 }
  0x1f   : > { %p2266_p10 = pnand %p2264_p9, %p2252_p13  ;;  %p2273_p0 = por %p2272_p12, %p2271_p2 }
  0x21   : > { %p2267_p1 = pneg %p2266_p10 }
  0x23   : > { %p2274_p6 = pnand %p2273_p0, %p2267_p1 }
  0x25   : > { %2277 = shalt.err (!%p2274_p6)
}
  0x26   : > { %s2410_s7 = smov 128   ;;  %s2411_s8 = smov 8  }
  0x27   : > { %1967 = dma.hbm_to_vmem [thread:$0]  (!%p2490_p11), %s3243_s1, 2048, %s2483_s22, [#allocation6], %s2410_s7, %s2410_s7, %s2411_s8  }
  0x28   : > { %s2278_s21 = scalar_lea.hbm %s3244_s2, 4096 }
  0x29   : > { %p2279_p1 = scmp.ne.s32.totalorder %s3244_s2, %s2278_s21  ;;  %p2285_p10 = scmp.lt.u32.totalorder %s2278_s21, %s3244_s2 }
  0x2b   : > { %p2281_p2 = pnand %p2279_p1, %p2252_p13 }
  0x2d   : > { %p2282_p6 = pneg %p2281_p2 }
  0x2f   : > { %p2287_p3 = pnand %p2285_p10, %p2282_p6 }
  0x31   : > { %2290 = shalt.err (!%p2287_p3)
}
  0x32   : > { %s2291_s22 = scalar_lea.vmem %s2494_s25, 4096  ;;  %p2299_p12 = scmp.lt.s32.totalorder %s2494_s25, %s2494_s25 }
  0x33   : > { %p2292_p5 = scmp.ne.s32.totalorder %s2494_s25, %s2291_s22  ;;  %p2300_p0 = scmp.lt.s32.totalorder %s2291_s22, %s2291_s22 }
  0x35   : > { %p2294_p7 = pnand %p2292_p5, %p2252_p13  ;;  %p2301_p1 = por %p2300_p0, %p2299_p12 }
  0x37   : > { %p2295_p9 = pneg %p2294_p7 }
  0x39   : > { %p2302_p2 = pnand %p2301_p1, %p2295_p9 }
  0x3b   : > { %2305 = shalt.err (!%p2302_p2)
}
  0x3c   : > { %s2412_s29 = smov 256   ;;  %s2413_s30 = smov 16  }
  0x3d   : > { %1970 = dma.hbm_to_vmem [thread:$0]  (!%p2490_p11), %s3244_s2, 4096, %s2494_s25, [#allocation6], %s2412_s29, %s2412_s29, %s2413_s30  }
  0x3e   : > { %s2552_s6 = sadd.s32 1, %s2406_s15   ;;  %s27_s10 = sadd.s32 1, %s2402_s14 }
  0x3f   : > { %s24_s9 = ssub.s32 %s2406_s15, %s2552_s6  ;;  %p34_p6 = scmp.ne.s32.totalorder %s2402_s14, %s2398_s13 }
  0x40   : > { %p25_p13 = scmp.eq.s32.totalorder %s24_s9, 0  ;;  %p35_p10 = scmp.eq.s32.totalorder %s2406_s15, 0 }
  0x41   : > { %p3253_p5 = scmp.eq.s32.totalorder %s2460_s16, 1  ;;  %p1981_p9 = scmp.lt.s32.totalorder %s2406_s15, 2 }
  0x42   : > { %s2561_s11 = scalar_select %p25_p13, %s2402_s14, %s27_s10  }
  0x43   : > { %p36_p3 = por %p35_p10, %p34_p6  ;;  %p2565_p7 = por %p3253_p5, %p34_p6 }
  0x44   : > { %s158_s23 = sand.u32 1, %s2402_s14   ;;  %s1742_s25 = sshll.u32 %s2406_s15, 12 }
  0x45   : > { %s3254_s17 = scalar_select %p2565_p7, 1, 0 }
  0x46   : > { %s1697_s21 = sshll.u32 %s158_s23, 8  ;;  %s2575_s27 = scalar_lea.hbm %s3242_s0, %s1742_s25 }
  0x47   : > { %s162_s28 = scalar_lea.vmem [#allocation2], %s1697_s21  ;;  %p2579_p11 = pnand %p1981_p9, %p36_p3 }
  0x48   : > { %s169_s22 = sshll.u32 %s162_s28, 4  ;;  %s2583_s30 = scalar_lea.sflag [#allocation3], %s158_s23  ;;  %s2577_s22 = int_to_ptr.vmem [resolvable:$true] %s169_s22 }
  0x49   : > { %s2306_s4 = scalar_lea.hbm %s2575_s27, 4096  ;;  %p2308_p0 = pneg %p2579_p11 }
  0x4a   : > { %p2307_p12 = scmp.ne.s32.totalorder %s2575_s27, %s2306_s4  ;;  %s2311_s10 = scalar_lea.hbm %s3242_s0, 8192 }
  0x4b   : > { %p2312_p13 = scmp.lt.u32.totalorder %s2575_s27, %s3242_s0  ;;  %p2313_p6 = scmp.lt.u32.totalorder %s2311_s10, %s2306_s4 }
  0x4c   : > { %p2309_p1 = pnand %p2308_p0, %p2307_p12  ;;  %p2315_p3 = scmp.lt.u32.totalorder %s2306_s4, %s2575_s27 }
  0x4d   : > { %p2314_p10 = por %p2313_p6, %p2312_p13 }
  0x4e   : > { %p2310_p2 = pneg %p2309_p1 }
  0x4f   : > { %p2316_p5 = por %p2315_p3, %p2314_p10 }
  0x51   : > { %p2317_p9 = pnand %p2316_p5, %p2310_p2 }
  0x53   : > { %2320 = shalt.err (!%p2317_p9)
}
  0x54   : > { %s2321_s23 = scalar_lea.vmem %s2577_s22, 4096  ;;  %s2414_s24 = smov [#allocation2]  }
  0x55   : > { %p2322_p12 = scmp.ne.s32.totalorder %s2577_s22, %s2321_s23  ;;  %s2326_s26 = sshll.u32 %s2414_s24, 4  ;;  %s2327_s26 = int_to_ptr.vmem [resolvable:$false] %s2326_s26 }
  0x56   : > { %s2328_s28 = scalar_lea.vmem %s2327_s26, 8192  ;;  %p2329_p4 = scmp.lt.s32.totalorder %s2577_s22, %s2327_s26 }
  0x57   : > { %p2324_p1 = pnand %p2322_p12, %p2308_p0  ;;  %p2330_p13 = scmp.lt.s32.totalorder %s2328_s28, %s2321_s23 }
  0x59   : > { %p2325_p7 = pneg %p2324_p1  ;;  %p2331_p6 = por %p2330_p13, %p2329_p4 }
  0x5b   : > { %p2332_p10 = pnand %p2331_p6, %p2325_p7 }
  0x5d   : > { %2335 = shalt.err (!%p2332_p10)
}
  0x5e   : > { %1974 = dma.hbm_to_vmem [thread:$0]  (!%p2579_p11), %s2575_s27, 4096, %s2577_s22, %s2583_s30, %s2410_s7, %s2410_s7, %s2411_s8  }
  0x5f   : > { %181 = sbr.rel (%p2479_p8) target bundleno = 879 (0x36f), region = 32  ;;  %s2617_s4 = sand.u32 (!%p2479_p8), 1, %s2398_s13  }
  0x60   : > { %s1701_s5 = sshll.u32 (!%p2479_p8), %s2617_s4, 8  ;;  %s184_s9 = scalar_lea.sflag (!%p2479_p8), [#allocation3], %s2617_s4 }
  0x61   : > { %s2623_s29 = scalar_lea.vmem (!%p2479_p8), [#allocation2], %s1701_s5  ;;  %p3256_p4 = scmp.ne.s32.totalorder (!%p2479_p8), %s3249_s18, 0 }
  0x66   : > { %2381 = dma.done.wait (%p3256_p4), %s184_s9, 4096  }
  0x67   : > { %2383 = vsyncadd (%p3256_p4), %s184_s9, 4294963200  ;;  %p3257_p7 = scmp.eq.s32.totalorder %s2460_s16, 0 }
  0x69   : > { %2385 = dma.done.wait (%p3257_p7), [#allocation6], 6144   ;;  %p3258_p8 = pmov %p3257_p7 }
  0x6a   : > { %v444_v0 = vld [vmem:[#allocation5] sm:$0xff]  ;;  %v445_v1 = vld [vmem:[#allocation5 + $0x8] sm:$0xff]  ;;  %v446_v2 = vld [vmem:[#allocation5 + $0x10] sm:$0xff]  ;;  %s3002_s18 = scalar_lea.vmem [#allocation8], %s1701_s5  ;;  %s1743_s20 = sshll.u32 %s2460_s16, 12 }
  0x6b   : > { %2387 = vsyncadd (%p3258_p8), [#allocation6], 4294961152  ;;  %v1872_v3 = vpack.c.bf16 %v445_v1, %v444_v0  ;;  %v447_v4 = vld [vmem:[#allocation5 + $0x18] sm:$0xff]  ;;  %v448_v6 = vld [vmem:[#allocation5 + $0x20] sm:$0xff]  ;;  %s1600_s7 = sshll.u32 %s3002_s18, 4  ;;  %s3190_s22 = scalar_lea.hbm %s3245_s3, %s1743_s20  ;;  %s3192_s7 = int_to_ptr.vmem [resolvable:$true] %s1600_s7 }
  0x6c   : > { %v1876_v5 = vpack.c.bf16 %v447_v4, %v446_v2  ;;  %v449_v7 = vld [vmem:[#allocation5 + $0x28] sm:$0xff]  ;;  %v220_v9 = vld [vmem:[%s2623_s29] sm:$0xff]  ;;  %v450_v10 = vld [vmem:[#allocation5 + $0x30] sm:$0xff]  ;;  %s1587_s16 = scalar_lea.sflag [#allocation4], %s2617_s4  ;;  %s2336_s30 = scalar_lea.vmem %s3192_s7, 4096 }
  0x6d   : > { %1873 = vmatprep.subr.bf16.mxu0 %v1872_v3  ;;  %v1880_v8 = vpack.c.bf16 %v449_v7, %v448_v6  ;;  %v451_v11 = vld [vmem:[#allocation5 + $0x38] sm:$0xff]  ;;  %vm252_vm0 = vcmp.ne.f32.partialorder %v220_v9, %v220_v9  ;;  %v452_v15 = vld [vmem:[#allocation5 + $0x40] sm:$0xff]  ;;  %v453_v16 = vld [vmem:[#allocation5 + $0x48] sm:$0xff]  ;;  %p2337_p11 = scmp.ne.s32.totalorder %s3192_s7, %s2336_s30  ;;  %p3259_p0 = scmp.ne.s32.totalorder %s3254_s17, 0 }
  0x6e   : > { %1875 = vmatpush3.bf16.msra.mxu0 %v1872_v3  ;;  %v284_v12 = vsel %vm252_vm0, 0.0, %v220_v9  ;;  %v1884_v13 = vpack.c.bf16 %v451_v11, %v450_v10  ;;  %v1888_v18 = vpack.c.bf16 %v453_v16, %v452_v15  ;;  %v454_v19 = vld [vmem:[#allocation5 + $0x50] sm:$0xff]  ;;  %v455_v20 = vld [vmem:[#allocation5 + $0x58] sm:$0xff]  ;;  %v221_v21 = vld [vmem:[%s2623_s29 + $0x8] sm:$0xff]  ;;  %s2416_s10 = smov [#allocation8]  }
  0x6f   : > { %1877 = vmatprep.subr.bf16.mxu0 %v1876_v5  ;;  %vm316_vm1 = vcmp.eq.f32.partialorder %v284_v12, inf  ;;  %v222_v22 = vld [vmem:[%s2623_s29 + $0x10] sm:$0xff]  ;;  %v1892_v23 = vpack.c.bf16 %v455_v20, %v454_v19  ;;  %vm253_vm3 = vcmp.ne.f32.partialorder %v221_v21, %v221_v21  ;;  %v456_v24 = vld [vmem:[#allocation5 + $0x60] sm:$0xff]  ;;  %v457_v25 = vld [vmem:[#allocation5 + $0x68] sm:$0xff]  ;;  %p2338_p2 = pnand %p2337_p11, %p3259_p0  ;;  %s2340_s21 = sshll.u32 %s2416_s10, 4  ;;  %s2341_s21 = int_to_ptr.vmem [resolvable:$false] %s2340_s21 }
  0x70   : > { %v348_v14 = vsel %vm316_vm1, 3.4028235e+38, %v284_v12  ;;  %vm254_vm4 = vcmp.ne.f32.partialorder %v222_v22, %v222_v22  ;;  %v223_v26 = vld [vmem:[%s2623_s29 + $0x18] sm:$0xff]  ;;  %v224_v27 = vld [vmem:[%s2623_s29 + $0x20] sm:$0xff]  ;;  %v285_v28 = vsel %vm253_vm3, 0.0, %v221_v21  ;;  %v1896_v29 = vpack.c.bf16 %v457_v25, %v456_v24  ;;  %v458_v31 = vld [vmem:[#allocation5 + $0x70] sm:$0xff]  ;;  %p2343_p5 = scmp.lt.s32.totalorder %s3192_s7, %s2341_s21 }
  0x71   : > { %vm380_vm2 = vcmp.eq.f32.partialorder %v348_v14, -inf  ;;  %v286_v30 = vsel %vm254_vm4, 0.0, %v222_v22  ;;  %vm255_vm5 = vcmp.ne.f32.partialorder %v223_v26, %v223_v26  ;;  %v459_v32 = vld [vmem:[#allocation5 + $0x78] sm:$0xff]  ;;  %vm256_vm6 = vcmp.ne.f32.partialorder %v224_v27, %v224_v27  ;;  %v225_v33 = vld [vmem:[%s2623_s29 + $0x28] sm:$0xff]  ;;  %v226_v34 = vld [vmem:[%s2623_s29 + $0x30] sm:$0xff]  ;;  %p2339_p3 = pneg %p2338_p2  ;;  %s2342_s25 = scalar_lea.vmem %s2341_s21, 8192 }
  0x72   : > { %1879 = vmatpush3.bf16.msra.mxu0 %v1876_v5  ;;  %v412_v17 = vsel %vm380_vm2, -3.4028235e+38, %v348_v14  ;;  %vm317_vm7 = vcmp.eq.f32.partialorder %v285_v28, inf  ;;  %vm318_vm8 = vcmp.eq.f32.partialorder %v286_v30, inf  ;;  %v287_v35 = vsel %vm255_vm5, 0.0, %v223_v26  ;;  %v227_v39 = vld [vmem:[%s2623_s29 + $0x38] sm:$0xff]  ;;  %p2344_p9 = scmp.lt.s32.totalorder %s2342_s25, %s2336_s30 }
  0x73   : > { %1881 = vmatprep.subr.bf16.mxu0 %v1880_v8  ;;  %1824 = vmatprep.mubr.f32.mxu0 %v412_v17  ;;  %v1900_v36 = vpack.c.bf16 %v459_v32, %v458_v31  ;;  %v288_v37 = vsel %vm256_vm6, 0.0, %v224_v27  ;;  %vm257_vm9 = vcmp.ne.f32.partialorder %v225_v33, %v225_v33  ;;  %v349_v38 = vsel %vm317_vm7, 3.4028235e+38, %v285_v28  ;;  %v228_v41 = vld [vmem:[%s2623_s29 + $0x40] sm:$0xff]  ;;  %v229_v45 = vld [vmem:[%s2623_s29 + $0x48] sm:$0xff]  ;;  %v230_v47 = vld [vmem:[%s2623_s29 + $0x50] sm:$0xff] }
  0x74   : > { %vm258_vm10 = vcmp.ne.f32.partialorder %v226_v34, %v226_v34  ;;  %v350_v40 = vsel %vm318_vm8, 3.4028235e+38, %v286_v30  ;;  %vm319_vm11 = vcmp.eq.f32.partialorder %v287_v35, inf  ;;  %vm320_vm12 = vcmp.eq.f32.partialorder %v288_v37, inf  ;;  %v231_v52 = vld [vmem:[%s2623_s29 + $0x58] sm:$0xff]  ;;  %v232_v55 = vld [vmem:[%s2623_s29 + $0x60] sm:$0xff]  ;;  %p2345_p12 = por %p2344_p9, %p2343_p5 }
  0x75   : > { %v289_v42 = vsel %vm257_vm9, 0.0, %v225_v33  ;;  %vm381_vm13 = vcmp.eq.f32.partialorder %v349_v38, -inf  ;;  %v290_v43 = vsel %vm258_vm10, 0.0, %v226_v34  ;;  %vm259_vm14 = vcmp.ne.f32.partialorder %v227_v39, %v227_v39  ;;  %v233_v60 = vld [vmem:[%s2623_s29 + $0x68] sm:$0xff]  ;;  %v234_v62 = vld [vmem:[%s2623_s29 + $0x70] sm:$0xff]  ;;  %v235_v4 = vld [vmem:[%s2623_s29 + $0x78] sm:$0xff] }
  0x76   : > { %1883 = vmatpush3.bf16.msra.mxu0 %v1880_v8  ;;  %vm382_vm15 = vcmp.eq.f32.partialorder %v350_v40, -inf  ;;  %v351_v44 = vsel %vm319_vm11, 3.4028235e+38, %v287_v35  ;;  %vm260_vm0 = vcmp.ne.f32.partialorder %v228_v41, %v228_v41  ;;  %v352_v46 = vsel %vm320_vm12, 3.4028235e+38, %v288_v37  ;;  %v236_v8 = vld [vmem:[%s2623_s29 + $0x80] sm:$0xff]  ;;  %p2346_p1 = pnand %p2345_p12, %p2339_p3 }
  0x77   : > { %1885 = vmatprep.subr.bf16.mxu0 %v1884_v13  ;;  %vm321_vm1 = vcmp.eq.f32.partialorder %v289_v42, inf  ;;  %v413_v48 = vsel %vm381_vm13, -3.4028235e+38, %v349_v38  ;;  %vm322_vm2 = vcmp.eq.f32.partialorder %v290_v43, inf  ;;  %v291_v49 = vsel %vm259_vm14, 0.0, %v227_v39  ;;  %v238_v14 = vld [vmem:[%s2623_s29 + $0x90] sm:$0xff] }
  0x78   : > { %v414_v50 = vsel %vm382_vm15, -3.4028235e+38, %v350_v40  ;;  %vm383_vm3 = vcmp.eq.f32.partialorder %v351_v44, -inf  ;;  %v292_v51 = vsel %vm260_vm0, 0.0, %v228_v41  ;;  %vm261_vm4 = vcmp.ne.f32.partialorder %v229_v45, %v229_v45  ;;  %v718_v24 = vld [vmem:[#allocation7 + $0x8] sm:$0xff]  ;;  %v720_v27 = vld [vmem:[#allocation7 + $0x18] sm:$0xff] }
  0x79   : > { %vm384_vm5 = vcmp.eq.f32.partialorder %v352_v46, -inf  ;;  %v353_v53 = vsel %vm321_vm1, 3.4028235e+38, %v289_v42  ;;  %vm262_vm6 = vcmp.ne.f32.partialorder %v230_v47, %v230_v47  ;;  %v354_v54 = vsel %vm322_vm2, 3.4028235e+38, %v290_v43  ;;  %v717_v28 = vld [vmem:[#allocation7] sm:$0xff] }
  0x7a   : > { %1887 = vmatpush3.bf16.msra.mxu0 %v1884_v13  ;;  %vm323_vm7 = vcmp.eq.f32.partialorder %v291_v49, inf  ;;  %v415_v56 = vsel %vm383_vm3, -3.4028235e+38, %v351_v44  ;;  %vm324_vm8 = vcmp.eq.f32.partialorder %v292_v51, inf  ;;  %v293_v57 = vsel %vm261_vm4, 0.0, %v229_v45  ;;  %v237_v13 = vld [vmem:[%s2623_s29 + $0x88] sm:$0xff] }
  0x7b   : > { %1889 = vmatprep.subr.bf16.mxu0 %v1888_v18  ;;  %vm263_vm9 = vcmp.ne.f32.partialorder %v231_v52, %v231_v52  ;;  %v416_v58 = vsel %vm384_vm5, -3.4028235e+38, %v352_v46  ;;  %vm385_vm10 = vcmp.eq.f32.partialorder %v353_v53, -inf  ;;  %v294_v59 = vsel %vm262_vm6, 0.0, %v230_v47  ;;  %v241_v31 = vld [vmem:[%s2623_s29 + $0xa8] sm:$0xff]  ;;  %v724_v33 = vld [vmem:[#allocation7 + $0x38] sm:$0xff] }
  0x7c   : > { %vm386_vm11 = vcmp.eq.f32.partialorder %v354_v54, -inf  ;;  %v355_v61 = vsel %vm323_vm7, 3.4028235e+38, %v291_v49  ;;  %vm264_vm12 = vcmp.ne.f32.partialorder %v232_v55, %v232_v55  ;;  %v356_v63 = vsel %vm324_vm8, 3.4028235e+38, %v292_v51  ;;  %v722_v32 = vld [vmem:[#allocation7 + $0x28] sm:$0xff] }
  0x7d   : > { %vm325_vm13 = vcmp.eq.f32.partialorder %v293_v57, inf  ;;  %v295_v0 = vsel %vm263_vm9, 0.0, %v231_v52  ;;  %v417_v1 = vsel %vm385_vm10, -3.4028235e+38, %v353_v53  ;;  %vm326_vm14 = vcmp.eq.f32.partialorder %v294_v59, inf  ;;  %v242_v37 = vld [vmem:[%s2623_s29 + $0xb0] sm:$0xff] }
  0x7e   : > { %1891 = vmatpush3.bf16.msra.mxu0 %v1888_v18  ;;  %vm265_vm15 = vcmp.ne.f32.partialorder %v233_v60, %v233_v60  ;;  %v418_v2 = vsel %vm386_vm11, -3.4028235e+38, %v354_v54  ;;  %vm387_vm0 = vcmp.eq.f32.partialorder %v355_v61, -inf  ;;  %v296_v3 = vsel %vm264_vm12, 0.0, %v232_v55  ;;  %v239_v18 = vld [vmem:[%s2623_s29 + $0x98] sm:$0xff]  ;;  %v721_v40 = vld [vmem:[#allocation7 + $0x20] sm:$0xff] }
  0x7f   : > { %1893 = vmatprep.subr.bf16.mxu0 %v1892_v23  ;;  %vm266_vm1 = vcmp.ne.f32.partialorder %v234_v62, %v234_v62  ;;  %vm388_vm2 = vcmp.eq.f32.partialorder %v356_v63, -inf  ;;  %v357_v5 = vsel %vm325_vm13, 3.4028235e+38, %v293_v57  ;;  %vm327_vm3 = vcmp.eq.f32.partialorder %v295_v0, inf  ;;  %v723_v41 = vld [vmem:[#allocation7 + $0x30] sm:$0xff]  ;;  %v243_v43 = vld [vmem:[%s2623_s29 + $0xb8] sm:$0xff] }
  0x80   : > { %v358_v6 = vsel %vm326_vm14, 3.4028235e+38, %v294_v59  ;;  %v297_v7 = vsel %vm265_vm15, 0.0, %v233_v60  ;;  %v419_v9 = vsel %vm387_vm0, -3.4028235e+38, %v355_v61  ;;  %vm328_vm4 = vcmp.eq.f32.partialorder %v296_v3, inf }
  0x81   : > { %v298_v10 = vsel %vm266_vm1, 0.0, %v234_v62  ;;  %vm267_vm5 = vcmp.ne.f32.partialorder %v235_v4, %v235_v4  ;;  %v420_v11 = vsel %vm388_vm2, -3.4028235e+38, %v356_v63  ;;  %vm389_vm6 = vcmp.eq.f32.partialorder %v357_v5, -inf  ;;  %v726_v45 = vld [vmem:[#allocation7 + $0x48] sm:$0xff]  ;;  %v728_v46 = vld [vmem:[#allocation7 + $0x58] sm:$0xff] }
  0x82   : > { %1895 = vmatpush3.bf16.msra.mxu0 %v1892_v23  ;;  %v359_v12 = vsel %vm327_vm3, 3.4028235e+38, %v295_v0  ;;  %vm390_vm7 = vcmp.eq.f32.partialorder %v358_v6, -inf  ;;  %vm329_vm8 = vcmp.eq.f32.partialorder %v297_v7, inf  ;;  %vm268_vm9 = vcmp.ne.f32.partialorder %v236_v8, %v236_v8  ;;  %v240_v23 = vld [vmem:[%s2623_s29 + $0xa0] sm:$0xff]  ;;  %v732_v59 = vld [vmem:[#allocation7 + $0x78] sm:$0xff] }
  0x83   : > { %1897 = vmatprep.subr.bf16.mxu0 %v1896_v29  ;;  %v360_v15 = vsel %vm328_vm4, 3.4028235e+38, %v296_v3  ;;  %vm330_vm10 = vcmp.eq.f32.partialorder %v298_v10, inf  ;;  %v299_v16 = vsel %vm267_vm5, 0.0, %v235_v4  ;;  %v421_v17 = vsel %vm389_vm6, -3.4028235e+38, %v357_v5 }
  0x84   : > { %vm391_vm11 = vcmp.eq.f32.partialorder %v359_v12, -inf  ;;  %vm269_vm12 = vcmp.ne.f32.partialorder %v237_v13, %v237_v13  ;;  %v422_v19 = vsel %vm390_vm7, -3.4028235e+38, %v358_v6  ;;  %v361_v20 = vsel %vm329_vm8, 3.4028235e+38, %v297_v7  ;;  %v725_v55 = vld [vmem:[#allocation7 + $0x40] sm:$0xff] }
  0x85   : > { %v300_v21 = vsel %vm268_vm9, 0.0, %v236_v8  ;;  %vm270_vm13 = vcmp.ne.f32.partialorder %v238_v14, %v238_v14  ;;  %vm392_vm14 = vcmp.eq.f32.partialorder %v360_v15, -inf  ;;  %v362_v22 = vsel %vm330_vm10, 3.4028235e+38, %v298_v10  ;;  %v244_v57 = vld [vmem:[%s2623_s29 + $0xc0] sm:$0xff]  ;;  %v245_v0 = vld [vmem:[%s2623_s29 + $0xc8] sm:$0xff] }
  0x86   : > { %1899 = vmatpush3.bf16.msra.mxu0 %v1896_v29  ;;  %vm331_vm15 = vcmp.eq.f32.partialorder %v299_v16, inf  ;;  %v423_v25 = vsel %vm391_vm11, -3.4028235e+38, %v359_v12  ;;  %v301_v26 = vsel %vm269_vm12, 0.0, %v237_v13  ;;  %vm271_vm0 = vcmp.ne.f32.partialorder %v239_v18, %v239_v18  ;;  %v719_v29 = vld [vmem:[#allocation7 + $0x10] sm:$0xff]  ;;  %v729_v5 = vld [vmem:[#allocation7 + $0x60] sm:$0xff] }
  0x87   : > { %1901 = vmatprep.subr.bf16.mxu0 %v1900_v36  ;;  %vm393_vm1 = vcmp.eq.f32.partialorder %v361_v20, -inf  ;;  %vm332_vm2 = vcmp.eq.f32.partialorder %v300_v21, inf  ;;  %v302_v30 = vsel %vm270_vm13, 0.0, %v238_v14  ;;  %v424_v34 = vsel %vm392_vm14, -3.4028235e+38, %v360_v15  ;;  %v731_v6 = vld [vmem:[#allocation7 + $0x70] sm:$0xff] }
  0x88   : > { %vm394_vm3 = vcmp.eq.f32.partialorder %v362_v22, -inf  ;;  %v363_v35 = vsel %vm331_vm15, 3.4028235e+38, %v299_v16  ;;  %vm272_vm4 = vcmp.ne.f32.partialorder %v240_v23, %v240_v23  ;;  %vm333_vm5 = vcmp.eq.f32.partialorder %v301_v26, inf  ;;  %v246_v8 = vld [vmem:[%s2623_s29 + $0xd0] sm:$0xff]  ;;  %v736_v10 = vld [vmem:[#allocation7 + $0x98] sm:$0xff] }
  0x89   : > { %v1904_v38 = vpack.c.bf16 %v720_v27, %v718_v24  ;;  %v1906_v39 = vpack.c.bf16 %v719_v29, %v717_v28  ;;  %v364_v42 = vsel %vm332_vm2, 3.4028235e+38, %v300_v21  ;;  %vm334_vm6 = vcmp.eq.f32.partialorder %v302_v30, inf  ;;  %v247_v16 = vld [vmem:[%s2623_s29 + $0xd8] sm:$0xff]  ;;  %v249_v28 = vld [vmem:[%s2623_s29 + $0xe8] sm:$0xff] }
  0x8a   : > { %1903 = vmatpush3.bf16.msra.mxu0 %v1900_v36  ;;  %v303_v36 = vsel %vm271_vm0, 0.0, %v239_v18  ;;  %vm273_vm7 = vcmp.ne.f32.partialorder %v241_v31, %v241_v31  ;;  %v1908_v44 = vpack.c.bf16 %v724_v33, %v722_v32  ;;  %v425_v47 = vsel %vm393_vm1, -3.4028235e+38, %v361_v20  ;;  %v733_v18 = vld [vmem:[#allocation7 + $0x80] sm:$0xff]  ;;  %v740_v24 = vld [vmem:[#allocation7 + $0xb8] sm:$0xff]  ;;  %v739_v33 = vld [vmem:[#allocation7 + $0xb0] sm:$0xff] }
  0x8b   : > { %vm395_vm8 = vcmp.eq.f32.partialorder %v363_v35, -inf  ;;  %v304_v49 = vsel %vm272_vm4, 0.0, %v240_v23  ;;  %1905 = vmatprep.subr.bf16.mxu0 %v1904_v38  ;;  %vm335_vm9 = vcmp.eq.f32.partialorder %v303_v36, inf  ;;  %vm274_vm10 = vcmp.ne.f32.partialorder %v242_v37, %v242_v37  ;;  %1936 = vmatprep.subr.bf16.mxu1 %v1904_v38  ;;  %v738_v23 = vld [vmem:[#allocation7 + $0xa8] sm:$0xff]  ;;  %v737_v32 = vld [vmem:[#allocation7 + $0xa0] sm:$0xff] }
  0x8c   : > { %v1910_v51 = vpack.c.bf16 %v723_v41, %v721_v40  ;;  %vm396_vm11 = vcmp.eq.f32.partialorder %v364_v42, -inf  ;;  %v366_v52 = vsel %vm334_vm6, 3.4028235e+38, %v302_v30  ;;  %v305_v53 = vsel %vm273_vm7, 0.0, %v241_v31  ;;  %1944 = vmatpush1.bf16.msra.mxu1 %v1906_v39  ;;  %v250_v30 = vld [vmem:[%s2623_s29 + $0xf0] sm:$0xff] }
  0x8d   : > { %1825 = vmatmul.mubr.f32.vlgmr.msra.gmra.mrb[0].mxu0 %v413_v48  ;;  %v426_v48 = vsel %vm394_vm3, -3.4028235e+38, %v362_v22  ;;  %v1912_v54 = vpack.c.bf16 %v728_v46, %v726_v45  ;;  %vm336_vm12 = vcmp.eq.f32.partialorder %v304_v49, inf  ;;  %vm275_vm13 = vcmp.ne.f32.partialorder %v243_v43, %v243_v43  ;;  %1937 = vmatprep.subr.bf16.mxu1 %v1908_v44  ;;  %v248_v22 = vld [vmem:[%s2623_s29 + $0xe0] sm:$0xff]  ;;  %v743_v46 = vld [vmem:[#allocation7 + $0xd0] sm:$0xff] }
  0x8e   : > { %1827 = vmatprep.mubr.f32.mxu0 %v414_v50  ;;  %v365_v50 = vsel %vm333_vm5, 3.4028235e+38, %v301_v26  ;;  %1907 = vmatpush1.bf16.msra.mxu0 %v1906_v39  ;;  %v427_v60 = vsel %vm395_vm8, -3.4028235e+38, %v363_v35  ;;  %v367_v61 = vsel %vm335_vm9, 3.4028235e+38, %v303_v36  ;;  %vm276_vm1 = vcmp.ne.f32.partialorder %v244_v57, %v244_v57 }
  0x8f   : > { %1909 = vmatprep.subr.bf16.mxu0 %v1908_v44  ;;  %vm397_vm14 = vcmp.eq.f32.partialorder %v365_v50, -inf  ;;  %v306_v62 = vsel %vm274_vm10, 0.0, %v242_v37  ;;  %v428_v63 = vsel %vm396_vm11, -3.4028235e+38, %v364_v42  ;;  %vm398_vm15 = vcmp.eq.f32.partialorder %v366_v52, -inf  ;;  %v742_v36 = vld [vmem:[#allocation7 + $0xc8] sm:$0xff] }
  0x90   : > { %vm337_vm0 = vcmp.eq.f32.partialorder %v305_v53, inf  ;;  %v307_v3 = vsel %vm275_vm13, 0.0, %v243_v43  ;;  %1945 = vmatpush1.bf16.msra.mxu1 %v1910_v51  ;;  %v429_v7 = vsel %vm397_vm14, -3.4028235e+38, %v365_v50  ;;  %vm338_vm2 = vcmp.eq.f32.partialorder %v306_v62, inf  ;;  %v744_v37 = vld [vmem:[#allocation7 + $0xd8] sm:$0xff] }
  0x91   : > { %1828 = vmatmul.mubr.f32.gmra.mrb[2].mxu0 %v415_v56  ;;  %v727_v56 = vld [vmem:[#allocation7 + $0x50] sm:$0xff]  ;;  %1938 = vmatprep.subr.bf16.mxu1 %v1912_v54  ;;  %vm399_vm3 = vcmp.eq.f32.partialorder %v367_v61, -inf  ;;  %v369_v12 = vsel %vm337_vm0, 3.4028235e+38, %v305_v53  ;;  %vm277_vm4 = vcmp.ne.f32.partialorder %v245_v0, %v245_v0  ;;  %vm339_vm6 = vcmp.eq.f32.partialorder %v307_v3, inf  ;;  %v251_v43 = vld [vmem:[%s2623_s29 + $0xf8] sm:$0xff] }
  0x92   : > { %1830 = vmatprep.mubr.f32.mxu0 %v416_v58  ;;  %v730_v58 = vld [vmem:[#allocation7 + $0x68] sm:$0xff]  ;;  %1911 = vmatpush1.bf16.msra.mxu0 %v1910_v51  ;;  %v308_v13 = vsel %vm276_vm1, 0.0, %v244_v57  ;;  %v1918_v14 = vpack.c.bf16 %v731_v6, %v729_v5  ;;  %v370_v15 = vsel %vm338_vm2, 3.4028235e+38, %v306_v62  ;;  %vm278_vm7 = vcmp.ne.f32.partialorder %v246_v8, %v246_v8  ;;  %v741_v45 = vld [vmem:[#allocation7 + $0xc0] sm:$0xff]  ;;  %v747_v6 = vld [vmem:[#allocation7 + $0xf0] sm:$0xff] }
  0x93   : > { %1913 = vmatprep.subr.bf16.mxu0 %v1912_v54  ;;  %v1916_v4 = vpack.c.bf16 %v732_v59, %v730_v58  ;;  %v431_v20 = vsel %vm399_vm3, -3.4028235e+38, %v367_v61  ;;  %v309_v21 = vsel %vm277_vm4, 0.0, %v245_v0  ;;  %vm401_vm8 = vcmp.eq.f32.partialorder %v369_v12, -inf  ;;  %v745_v5 = vld [vmem:[#allocation7 + $0xe0] sm:$0xff] }
  0x94   : > { %v371_v26 = vsel %vm339_vm6, 3.4028235e+38, %v307_v3  ;;  %vm340_vm9 = vcmp.eq.f32.partialorder %v308_v13, inf  ;;  %vm402_vm10 = vcmp.eq.f32.partialorder %v370_v15, -inf  ;;  %v310_v27 = vsel %vm278_vm7, 0.0, %v246_v8  ;;  %v748_v3 = vld [vmem:[#allocation7 + $0xf8] sm:$0xff] }
  0x95   : > { %1831 = vmatmul.mubr.f32.gmra.mrb[4].mxu0 %v417_v1  ;;  %v1914_v1 = vpack.c.bf16 %v727_v56, %v725_v55  ;;  %vm279_vm11 = vcmp.ne.f32.partialorder %v247_v16, %v247_v16  ;;  %vm280_vm13 = vcmp.ne.f32.partialorder %v248_v22, %v248_v22  ;;  %v1924_v31 = vpack.c.bf16 %v740_v24, %v738_v23 }
  0x96   : > { %1833 = vmatprep.mubr.f32.mxu0 %v418_v2  ;;  %v368_v2 = vsel %vm336_vm12, 3.4028235e+38, %v304_v49  ;;  %vm341_vm12 = vcmp.eq.f32.partialorder %v309_v21, inf  ;;  %v372_v35 = vsel %vm340_vm9, 3.4028235e+38, %v308_v13  ;;  %vm403_vm14 = vcmp.eq.f32.partialorder %v371_v26, -inf }
  0x97   : > { %vm400_vm5 = vcmp.eq.f32.partialorder %v368_v2, -inf  ;;  %1915 = vmatpush1.bf16.msra.mxu0 %v1914_v1  ;;  %1946 = vmatpush1.bf16.msra.mxu1 %v1914_v1  ;;  %v434_v38 = vsel %vm402_vm10, -3.4028235e+38, %v370_v15  ;;  %v311_v39 = vsel %vm279_vm11, 0.0, %v247_v16  ;;  %v373_v40 = vsel %vm341_vm12, 3.4028235e+38, %v309_v21 }
  0x98   : > { %1917 = vmatprep.subr.bf16.mxu0 %v1916_v4  ;;  %1939 = vmatprep.subr.bf16.mxu1 %v1916_v4  ;;  %v312_v41 = vsel %vm280_vm13, 0.0, %v248_v22  ;;  %vm281_vm0 = vcmp.ne.f32.partialorder %v249_v28, %v249_v28  ;;  %v1926_v42 = vpack.c.bf16 %v739_v33, %v737_v32  ;;  %vm404_vm1 = vcmp.eq.f32.partialorder %v372_v35, -inf }
  0x99   : > { %1834 = vmatmul.mubr.f32.gmra.mrb[6].mxu0 %v419_v9  ;;  %v734_v9 = vld [vmem:[#allocation7 + $0x88] sm:$0xff]  ;;  %vm282_vm2 = vcmp.ne.f32.partialorder %v250_v30, %v250_v30  ;;  %v1928_v44 = vpack.c.bf16 %v744_v37, %v742_v36  ;;  %vm343_vm3 = vcmp.eq.f32.partialorder %v311_v39, inf  ;;  %vm405_vm4 = vcmp.eq.f32.partialorder %v373_v40, -inf }
  0x9a   : > { %1836 = vmatprep.mubr.f32.mxu0 %v420_v11  ;;  %v430_v11 = vsel %vm398_vm15, -3.4028235e+38, %v366_v52  ;;  %vm342_vm15 = vcmp.eq.f32.partialorder %v310_v27, inf  ;;  %v313_v49 = vsel %vm281_vm0, 0.0, %v249_v28  ;;  %v436_v50 = vsel %vm404_vm1, -3.4028235e+38, %v372_v35 }
  0x9b   : > { %1919 = vmatpush1.bf16.msra.mxu0 %v1918_v14  ;;  %1947 = vmatpush1.bf16.msra.mxu1 %v1918_v14  ;;  %v314_v51 = vsel %vm282_vm2, 0.0, %v250_v30  ;;  %vm283_vm6 = vcmp.ne.f32.partialorder %v251_v43, %v251_v43  ;;  %v1930_v52 = vpack.c.bf16 %v743_v46, %v741_v45  ;;  %v375_v53 = vsel %vm343_vm3, 3.4028235e+38, %v311_v39 }
  0x9c   : > { %v437_v55 = vsel %vm405_vm4, -3.4028235e+38, %v373_v40  ;;  %vm346_vm9 = vcmp.eq.f32.partialorder %v314_v51, inf  ;;  %v315_v56 = vsel %vm283_vm6, 0.0, %v251_v43  ;;  %vm407_vm10 = vcmp.eq.f32.partialorder %v375_v53, -inf }
  0x9d   : > { %1837 = vmatmul.mubr.f32.gmra.mrb[8].mxu0 %v421_v17  ;;  %v1920_v17 = vpack.c.bf16 %v736_v10, %v734_v9  ;;  %v378_v59 = vsel %vm346_vm9, 3.4028235e+38, %v314_v51  ;;  %vm347_vm12 = vcmp.eq.f32.partialorder %v315_v56, inf  ;;  %v2415_v8 = vmov 0.0  }
  0x9e   : > { %1839 = vmatprep.mubr.f32.mxu0 %v422_v19  ;;  %v735_v19 = vld [vmem:[#allocation7 + $0x90] sm:$0xff]  ;;  %v379_v62 = vsel %vm347_vm12, 3.4028235e+38, %v315_v56  ;;  %861 = vmatprep.mubr.f32.mxu1 %v2415_v8 }
  0x9f   : > { %v1922_v29 = vpack.c.bf16 %v735_v19, %v733_v18  ;;  %1921 = vmatprep.subr.bf16.mxu0 %v1920_v17  ;;  %1940 = vmatprep.subr.bf16.mxu1 %v1920_v17 }
  0xa1   : > { %1840 = vmatmul.mubr.f32.gmra.mrb[10].mxu0 %v423_v25  ;;  %v432_v25 = vsel %vm400_vm5, -3.4028235e+38, %v368_v2  ;;  %1948 = vmatpush1.bf16.msra.mxu1 %v1922_v29  ;;  %vm344_vm5 = vcmp.eq.f32.partialorder %v312_v41, inf  ;;  %v746_v2 = vld [vmem:[#allocation7 + $0xe8] sm:$0xff] }
  0xa2   : > { %1842 = vmatprep.mubr.f32.mxu0 %v424_v34  ;;  %v433_v34 = vsel %vm401_vm8, -3.4028235e+38, %v369_v12  ;;  %1923 = vmatpush1.bf16.msra.mxu0 %v1922_v29  ;;  %v376_v54 = vsel %vm344_vm5, 3.4028235e+38, %v312_v41  ;;  %vm345_vm8 = vcmp.eq.f32.partialorder %v313_v49, inf  ;;  %v1932_v4 = vpack.c.bf16 %v748_v3, %v746_v2 }
  0xa3   : > { %1925 = vmatprep.subr.bf16.mxu0 %v1924_v31  ;;  %1941 = vmatprep.subr.bf16.mxu1 %v1924_v31  ;;  %vm408_vm11 = vcmp.eq.f32.partialorder %v376_v54, -inf  ;;  %v377_v58 = vsel %vm345_vm8, 3.4028235e+38, %v313_v49 }
  0xa4   : > { %v440_v61 = vsel %vm408_vm11, -3.4028235e+38, %v376_v54  ;;  %vm409_vm13 = vcmp.eq.f32.partialorder %v377_v58, -inf }
  0xa5   : > { %1843 = vmatmul.mubr.f32.gmra.mrb[12].mxu0 %v425_v47  ;;  %v374_v47 = vsel %vm342_vm15, 3.4028235e+38, %v310_v27  ;;  %1949 = vmatpush1.bf16.msra.mxu1 %v1926_v42  ;;  %vm411_vm15 = vcmp.eq.f32.partialorder %v379_v62, -inf }
  0xa6   : > { %1845 = vmatprep.mubr.f32.mxu0 %v426_v48  ;;  %v435_v48 = vsel %vm403_vm14, -3.4028235e+38, %v371_v26  ;;  %1927 = vmatpush1.bf16.msra.mxu0 %v1926_v42  ;;  %vm406_vm7 = vcmp.eq.f32.partialorder %v374_v47, -inf  ;;  %vm410_vm14 = vcmp.eq.f32.partialorder %v378_v59, -inf  ;;  %v443_v1 = vsel %vm411_vm15, -3.4028235e+38, %v379_v62 }
  0xa7   : > { %1929 = vmatprep.subr.bf16.mxu0 %v1928_v44  ;;  %1942 = vmatprep.subr.bf16.mxu1 %v1928_v44  ;;  %v438_v57 = vsel %vm406_vm7, -3.4028235e+38, %v374_v47  ;;  %v442_v0 = vsel %vm410_vm14, -3.4028235e+38, %v378_v59 }
  0xa9   : > { %1846 = vmatmul.mubr.f32.gmra.mrb[14].mxu0 %v427_v60  ;;  %1950 = vmatpush1.bf16.msra.mxu1 %v1930_v52  ;;  %v439_v60 = vsel %vm407_vm10, -3.4028235e+38, %v375_v53 }
  0xaa   : > { %1848 = vmatprep.mubr.f32.mxu0 %v428_v63  ;;  %1931 = vmatpush1.bf16.msra.mxu0 %v1930_v52  ;;  %v441_v63 = vsel %vm409_vm13, -3.4028235e+38, %v377_v58 }
  0xab   : > { %1933 = vmatprep.subr.bf16.mxu0 %v1932_v4  ;;  %1943 = vmatprep.subr.bf16.mxu1 %v1932_v4 }
  0xad   : > { %1849 = vmatmul.mubr.f32.gmra.mrb[16].mxu0 %v429_v7  ;;  %v1934_v7 = vpack.c.bf16 %v747_v6, %v745_v5 }
  0xae   : > { %1851 = vmatprep.mubr.f32.mxu0 %v430_v11 }
  0xaf   : > { %1935 = vmatpush1.bf16.msra.mxu0 %v1934_v7  ;;  %1951 = vmatpush1.bf16.msra.mxu1 %v1934_v7 }
  0xb1   : > { %1852 = vmatmul.mubr.f32.gmra.mrb[18].mxu0 %v431_v20 }
  0xb2   : > { %1854 = vmatprep.mubr.f32.mxu0 %v432_v25 }
  0xb5   : > { %1855 = vmatmul.mubr.f32.gmra.mrb[20].mxu0 %v433_v34 }
  0xb6   : > { %1857 = vmatprep.mubr.f32.mxu0 %v434_v38 }
  0xb9   : > { %1858 = vmatmul.mubr.f32.gmra.mrb[22].mxu0 %v435_v48 }
  0xba   : > { %1860 = vmatprep.mubr.f32.mxu0 %v436_v50 }
  0xbd   : > { %1861 = vmatmul.mubr.f32.gmra.mrb[24].mxu0 %v437_v55 }
  0xbe   : > { %1863 = vmatprep.mubr.f32.mxu0 %v438_v57 }
  0xc1   : > { %1864 = vmatmul.mubr.f32.gmra.mrb[26].mxu0 %v439_v60 }
  0xc2   : > { %1866 = vmatprep.mubr.f32.mxu0 %v440_v61 }
  0xc5   : > { %1867 = vmatmul.mubr.f32.gmra.mrb[28].mxu0 %v441_v63 }
  0xc6   : > { %1869 = vmatprep.mubr.f32.mxu0 %v442_v0 }
  0xc9   : > { %1870 = vmatmul.mubr.f32.gmra.mrb[30].mxu0 %v443_v1 }
  0xca   : > { %813 = vmatprep.mubr.f32.mxu0 %v2415_v8 }
 0x160   : > { %v1826_v9 = vpop.f32.mrb[0].mxu0 }
 0x161   : > { %v526_v10 = vpop.f32.mrb[1].mxu0  ;;  %v686_v14 = vmax.f32 %v1826_v9, 0.0 }
 0x162   : > { %v685_v11 = vmax.f32 %v526_v10, 0.0 }
 0x164   : > { %v1829_v12 = vpop.f32.mrb[2].mxu0  ;;  %814 = vmatmul.mubr.f32.vlgmr.msra.gmra.mrb[32].mxu0 %v685_v11 }
 0x165   : > { %v536_v13 = vpop.f32.mrb[3].mxu0  ;;  %819 = vmatprep.mubr.f32.mxu0 %v2415_v8  ;;  %v688_v20 = vmax.f32 %v1829_v12, 0.0 }
 0x166   : > { %v687_v17 = vmax.f32 %v536_v13, 0.0 }
 0x168   : > { %v1832_v15 = vpop.f32.mrb[4].mxu0  ;;  %820 = vmatmul.mubr.f32.gmra.mrb[34].mxu0 %v686_v14 }
 0x169   : > { %v546_v16 = vpop.f32.mrb[5].mxu0  ;;  %825 = vmatprep.mubr.f32.mxu0 %v2415_v8  ;;  %v690_v27 = vmax.f32 %v1832_v15, 0.0 }
 0x16a   : > { %v689_v23 = vmax.f32 %v546_v16, 0.0 }
 0x16c   : > { %v1835_v18 = vpop.f32.mrb[6].mxu0  ;;  %826 = vmatmul.mubr.f32.gmra.mrb[36].mxu0 %v687_v17 }
 0x16d   : > { %v556_v19 = vpop.f32.mrb[7].mxu0  ;;  %831 = vmatprep.mubr.f32.mxu0 %v2415_v8  ;;  %v692_v35 = vmax.f32 %v1835_v18, 0.0 }
 0x16e   : > { %v691_v32 = vmax.f32 %v556_v19, 0.0 }
 0x170   : > { %v1838_v21 = vpop.f32.mrb[8].mxu0  ;;  %832 = vmatmul.mubr.f32.gmra.mrb[38].mxu0 %v688_v20 }
 0x171   : > { %v566_v22 = vpop.f32.mrb[9].mxu0  ;;  %837 = vmatprep.mubr.f32.mxu0 %v2415_v8  ;;  %v694_v28 = vmax.f32 %v1838_v21, 0.0 }
 0x172   : > { %v693_v24 = vmax.f32 %v566_v22, 0.0 }
 0x174   : > { %838 = vmatmul.mubr.f32.gmra.mrb[40].mxu0 %v689_v23  ;;  %862 = vmatmul.mubr.f32.vlgmr.msra.gmra.mrb[0].mxu1 %v693_v24  ;;  %v1841_v25 = vpop.f32.mrb[10].mxu0 }
 0x175   : > { %843 = vmatprep.mubr.f32.mxu0 %v2415_v8  ;;  %867 = vmatprep.mubr.f32.mxu1 %v2415_v8  ;;  %v576_v26 = vpop.f32.mrb[11].mxu0  ;;  %v696_v36 = vmax.f32 %v1841_v25, 0.0 }
 0x176   : > { %v695_v29 = vmax.f32 %v576_v26, 0.0 }
 0x178   : > { %844 = vmatmul.mubr.f32.gmra.mrb[42].mxu0 %v690_v27  ;;  %868 = vmatmul.mubr.f32.gmra.mrb[2].mxu1 %v694_v28  ;;  %v1844_v30 = vpop.f32.mrb[12].mxu0 }
 0x179   : > { %849 = vmatprep.mubr.f32.mxu0 %v2415_v8  ;;  %873 = vmatprep.mubr.f32.mxu1 %v2415_v8  ;;  %v586_v31 = vpop.f32.mrb[13].mxu0  ;;  %v698_v42 = vmax.f32 %v1844_v30, 0.0 }
 0x17a   : > { %v697_v37 = vmax.f32 %v586_v31, 0.0 }
 0x17c   : > { %850 = vmatmul.mubr.f32.gmra.mrb[44].mxu0 %v691_v32  ;;  %874 = vmatmul.mubr.f32.gmra.mrb[4].mxu1 %v695_v29  ;;  %v1847_v33 = vpop.f32.mrb[14].mxu0 }
 0x17d   : > { %855 = vmatprep.mubr.f32.mxu0 %v2415_v8  ;;  %879 = vmatprep.mubr.f32.mxu1 %v2415_v8  ;;  %v596_v34 = vpop.f32.mrb[15].mxu0  ;;  %v700_v48 = vmax.f32 %v1847_v33, 0.0 }
 0x17e   : > { %v699_v43 = vmax.f32 %v596_v34, 0.0 }
 0x180   : > { %856 = vmatmul.mubr.f32.gmra.mrb[46].mxu0 %v692_v35  ;;  %880 = vmatmul.mubr.f32.gmra.mrb[6].mxu1 %v696_v36  ;;  %v1850_v38 = vpop.f32.mrb[16].mxu0 }
 0x181   : > { %885 = vmatprep.mubr.f32.mxu1 %v2415_v8  ;;  %v606_v39 = vpop.f32.mrb[17].mxu0  ;;  %v702_v54 = vmax.f32 %v1850_v38, 0.0 }
 0x182   : > { %v701_v49 = vmax.f32 %v606_v39, 0.0 }
 0x184   : > { %886 = vmatmul.mubr.f32.gmra.mrb[8].mxu1 %v697_v37  ;;  %v1853_v40 = vpop.f32.mrb[18].mxu0 }
 0x185   : > { %891 = vmatprep.mubr.f32.mxu1 %v2415_v8  ;;  %v616_v41 = vpop.f32.mrb[19].mxu0  ;;  %v704_v60 = vmax.f32 %v1853_v40, 0.0 }
 0x186   : > { %v703_v55 = vmax.f32 %v616_v41, 0.0 }
 0x188   : > { %892 = vmatmul.mubr.f32.gmra.mrb[10].mxu1 %v698_v42  ;;  %v1856_v44 = vpop.f32.mrb[20].mxu0 }
 0x189   : > { %897 = vmatprep.mubr.f32.mxu1 %v2415_v8  ;;  %v626_v45 = vpop.f32.mrb[21].mxu0  ;;  %v706_v62 = vmax.f32 %v1856_v44, 0.0 }
 0x18a   : > { %v705_v61 = vmax.f32 %v626_v45, 0.0 }
 0x18c   : > { %898 = vmatmul.mubr.f32.gmra.mrb[12].mxu1 %v699_v43  ;;  %v1859_v46 = vpop.f32.mrb[22].mxu0 }
 0x18d   : > { %903 = vmatprep.mubr.f32.mxu1 %v2415_v8  ;;  %v636_v47 = vpop.f32.mrb[23].mxu0  ;;  %v708_v0 = vmax.f32 %v1859_v46, 0.0 }
 0x18e   : > { %v707_v63 = vmax.f32 %v636_v47, 0.0 }
 0x190   : > { %904 = vmatmul.mubr.f32.gmra.mrb[14].mxu1 %v700_v48  ;;  %v1862_v50 = vpop.f32.mrb[24].mxu0 }
 0x191   : > { %909 = vmatprep.mubr.f32.mxu1 %v2415_v8  ;;  %v646_v51 = vpop.f32.mrb[25].mxu0  ;;  %v710_v2 = vmax.f32 %v1862_v50, 0.0 }
 0x192   : > { %v709_v1 = vmax.f32 %v646_v51, 0.0 }
 0x194   : > { %910 = vmatmul.mubr.f32.gmra.mrb[16].mxu1 %v701_v49  ;;  %v1865_v52 = vpop.f32.mrb[26].mxu0 }
 0x195   : > { %915 = vmatprep.mubr.f32.mxu1 %v2415_v8  ;;  %v656_v53 = vpop.f32.mrb[27].mxu0  ;;  %v712_v4 = vmax.f32 %v1865_v52, 0.0 }
 0x196   : > { %v711_v3 = vmax.f32 %v656_v53, 0.0 }
 0x198   : > { %916 = vmatmul.mubr.f32.gmra.mrb[18].mxu1 %v702_v54  ;;  %v1868_v56 = vpop.f32.mrb[28].mxu0 }
 0x199   : > { %921 = vmatprep.mubr.f32.mxu1 %v2415_v8  ;;  %v666_v57 = vpop.f32.mrb[29].mxu0  ;;  %v714_v6 = vmax.f32 %v1868_v56, 0.0 }
 0x19a   : > { %v713_v5 = vmax.f32 %v666_v57, 0.0 }
 0x19c   : > { %922 = vmatmul.mubr.f32.gmra.mrb[20].mxu1 %v703_v55  ;;  %v1871_v58 = vpop.f32.mrb[30].mxu0 }
 0x19d   : > { %927 = vmatprep.mubr.f32.mxu1 %v2415_v8  ;;  %v676_v59 = vpop.f32.mrb[31].mxu0  ;;  %v716_v9 = vmax.f32 %v1871_v58, 0.0 }
 0x19e   : > { %v715_v7 = vmax.f32 %v676_v59, 0.0 }
 0x1a0   : > { %928 = vmatmul.mubr.f32.gmra.mrb[22].mxu1 %v704_v60 }
 0x1a1   : > { %933 = vmatprep.mubr.f32.mxu1 %v2415_v8 }
 0x1a4   : > { %934 = vmatmul.mubr.f32.gmra.mrb[24].mxu1 %v705_v61 }
 0x1a5   : > { %939 = vmatprep.mubr.f32.mxu1 %v2415_v8 }
 0x1a8   : > { %940 = vmatmul.mubr.f32.gmra.mrb[26].mxu1 %v706_v62 }
 0x1a9   : > { %945 = vmatprep.mubr.f32.mxu1 %v2415_v8 }
 0x1ac   : > { %946 = vmatmul.mubr.f32.gmra.mrb[28].mxu1 %v707_v63 }
 0x1ad   : > { %951 = vmatprep.mubr.f32.mxu1 %v2415_v8 }
 0x1b0   : > { %952 = vmatmul.mubr.f32.gmra.mrb[30].mxu1 %v708_v0 }
 0x1b1   : > { %957 = vmatprep.mubr.f32.mxu1 %v2415_v8 }
 0x1b4   : > { %958 = vmatmul.mubr.f32.gmra.mrb[32].mxu1 %v709_v1 }
 0x1b5   : > { %963 = vmatprep.mubr.f32.mxu1 %v2415_v8 }
 0x1b8   : > { %964 = vmatmul.mubr.f32.gmra.mrb[34].mxu1 %v710_v2  ;;  %v2218_v2 = vld [vmem:[%s2623_s29] sm:$0xff] }
 0x1b9   : > { %969 = vmatprep.mubr.f32.mxu1 %v2415_v8 }
 0x1bc   : > { %970 = vmatmul.mubr.f32.gmra.mrb[36].mxu1 %v711_v3 }
 0x1bd   : > { %975 = vmatprep.mubr.f32.mxu1 %v2415_v8 }
 0x1c0   : > { %976 = vmatmul.mubr.f32.gmra.mrb[38].mxu1 %v712_v4 }
 0x1c1   : > { %981 = vmatprep.mubr.f32.mxu1 %v2415_v8 }
 0x1c4   : > { %982 = vmatmul.mubr.f32.gmra.mrb[40].mxu1 %v713_v5 }
 0x1c5   : > { %987 = vmatprep.mubr.f32.mxu1 %v2415_v8 }
 0x1c8   : > { %988 = vmatmul.mubr.f32.gmra.mrb[42].mxu1 %v714_v6 }
 0x1c9   : > { %993 = vmatprep.mubr.f32.mxu1 %v2415_v8 }
 0x1cc   : > { %994 = vmatmul.mubr.f32.gmra.mrb[44].mxu1 %v715_v7 }
 0x1cd   : > { %999 = vmatprep.mubr.f32.mxu1 %v2415_v8 }
 0x1d0   : > { %1000 = vmatmul.mubr.f32.gmra.mrb[46].mxu1 %v716_v9 }
 0x237   : > { %v815_v10 = vpop.f32.mrb[32].mxu0 }
 0x238   : > { %v1006_v11 = vadd.f32 2.0, %v815_v10  ;;  %v2735_v12 = vpop.f32.mrb[33].mxu0 }
 0x23a   : > { %v1705_v13 = vmul.f32 -1.442695, %v1006_v11 }
 0x23b   : > { %v821_v14 = vpop.f32.mrb[34].mxu0 }
 0x23c   : > { %2026 = vpow2.f32 %v1705_v13  ;;  %v1007_v15 = vadd.f32 2.0, %v821_v14  ;;  %v2737_v16 = vpop.f32.mrb[35].mxu0 }
 0x23e   : > { %v1706_v17 = vmul.f32 -1.442695, %v1007_v15 }
 0x23f   : > { %v827_v18 = vpop.f32.mrb[36].mxu0 }
 0x240   : > { %2028 = vpow2.f32 %v1706_v17  ;;  %v1008_v19 = vadd.f32 2.0, %v827_v18  ;;  %v2739_v20 = vpop.f32.mrb[37].mxu0  ;;  %v1326_v18 = vlaneseq }
 0x242   : > { %v1707_v21 = vmul.f32 -1.442695, %v1008_v19 }
 0x243   : > { %v833_v8 = vpop.f32.mrb[38].mxu0 }
 0x244   : > { %2030 = vpow2.f32 %v1707_v21  ;;  %v1009_v22 = vadd.f32 2.0, %v833_v8  ;;  %v2741_v23 = vpop.f32.mrb[39].mxu0  ;;  %v2219_v21 = vld [vmem:[%s2623_s29 + $0x8] sm:$0xff] }
 0x246   : > { %v2027_v24 = vpop.eup %2026  ;;  %v1708_v25 = vmul.f32 -1.442695, %v1009_v22 }
 0x247   : > { %v1134_v26 = vadd.f32 1.0, %v2027_v24  ;;  %v839_v27 = vpop.f32.mrb[40].mxu0  ;;  %v863_v28 = vpop.f32.mrb[0].mxu1 }
 0x248   : > { %2032 = vpow2.f32 %v1708_v25  ;;  %v1010_v29 = vadd.f32 2.0, %v839_v27  ;;  %v1014_v30 = vadd.f32 2.0, %v863_v28  ;;  %v2743_v31 = vpop.f32.mrb[41].mxu0  ;;  %v2745_v32 = vpop.f32.mrb[1].mxu1 }
 0x249   : > { %2034 = vrcp.f32 %v1134_v26 }
 0x24a   : > { %v2029_v33 = vpop.eup %2028  ;;  %v1709_v34 = vmul.f32 -1.442695, %v1010_v29  ;;  %v1713_v35 = vmul.f32 -1.442695, %v1014_v30 }
 0x24b   : > { %v1135_v36 = vadd.f32 1.0, %v2029_v33  ;;  %v845_v37 = vpop.f32.mrb[42].mxu0  ;;  %v869_v38 = vpop.f32.mrb[2].mxu1 }
 0x24c   : > { %2036 = vpow2.f32 %v1709_v34  ;;  %v1011_v39 = vadd.f32 2.0, %v845_v37  ;;  %v1015_v40 = vadd.f32 2.0, %v869_v38  ;;  %v2747_v41 = vpop.f32.mrb[43].mxu0  ;;  %v2749_v42 = vpop.f32.mrb[3].mxu1  ;;  %v2771_v34 = vand.u32 127, %v1326_v18 }
 0x24d   : > { %2038 = vrcp.f32 %v1135_v36  ;;  %v2220_v36 = vld [vmem:[%s2623_s29 + $0x10] sm:$0xff] }
 0x24e   : > { %v2031_v43 = vpop.eup %2030  ;;  %2040 = vpow2.f32 %v1713_v35  ;;  %v1710_v44 = vmul.f32 -1.442695, %v1011_v39  ;;  %v1714_v45 = vmul.f32 -1.442695, %v1015_v40  ;;  %vm1328_vm0 = vcmp.lt.s32.totalorder %v2771_v34, 8 }
 0x24f   : > { %v1136_v46 = vadd.f32 1.0, %v2031_v43  ;;  %v851_v47 = vpop.f32.mrb[44].mxu0  ;;  %v875_v48 = vpop.f32.mrb[4].mxu1  ;;  %vm1489_vm1 = vcmp.eq.s32.totalorder %v2771_v34, 8 }
 0x250   : > { %2042 = vpow2.f32 %v1710_v44  ;;  %v1012_v49 = vadd.f32 2.0, %v851_v47  ;;  %v1016_v50 = vadd.f32 2.0, %v875_v48  ;;  %v2751_v51 = vpop.f32.mrb[45].mxu0  ;;  %v2753_v52 = vpop.f32.mrb[5].mxu1 }
 0x251   : > { %2044 = vrcp.f32 %v1136_v46 }
 0x252   : > { %v2033_v53 = vpop.eup %2032  ;;  %2046 = vpow2.f32 %v1714_v45  ;;  %v1711_v54 = vmul.f32 -1.442695, %v1012_v49  ;;  %v1715_v55 = vmul.f32 -1.442695, %v1016_v50 }
 0x253   : > { %v2035_v56 = vpop.eup %2034  ;;  %v1137_v57 = vadd.f32 1.0, %v2033_v53  ;;  %v857_v58 = vpop.f32.mrb[46].mxu0  ;;  %v2221_v53 = vld [vmem:[%s2623_s29 + $0x18] sm:$0xff] }
 0x254   : > { %v881_v59 = vpop.f32.mrb[6].mxu1  ;;  %v1230_v60 = vadd.f32 0.001, %v2035_v56  ;;  %2048 = vpow2.f32 %v1711_v54  ;;  %v1013_v61 = vadd.f32 2.0, %v857_v58  ;;  %v2755_v63 = vpop.f32.mrb[47].mxu0 }
 0x255   : > { %v1017_v62 = vadd.f32 2.0, %v881_v59  ;;  %v2757_v0 = vpop.f32.mrb[7].mxu1  ;;  %2050 = vrcp.f32 %v1137_v57 }
 0x256   : > { %v2037_v1 = vpop.eup %2036  ;;  %v1262_v3 = vmul.f32 %v2218_v2, %v1230_v60  ;;  %2052 = vpow2.f32 %v1715_v55  ;;  %v1712_v4 = vmul.f32 -1.442695, %v1013_v61 }
 0x257   : > { %v1716_v5 = vmul.f32 -1.442695, %v1017_v62  ;;  %v2039_v6 = vpop.eup %2038  ;;  %v1138_v7 = vadd.f32 1.0, %v2037_v1  ;;  %v887_v9 = vpop.f32.mrb[8].mxu1  ;;  %2054 = vlog2.f32 %v1230_v60 }
 0x258   : > { %v2041_v10 = vpop.eup %2040  ;;  %v2761_v11 = vadd.f32 %v1262_v3, %v2735_v12  ;;  %v1231_v13 = vadd.f32 0.001, %v2039_v6  ;;  %2056 = vpow2.f32 %v1712_v4  ;;  %v1018_v14 = vadd.f32 2.0, %v887_v9  ;;  %v2763_v15 = vpop.f32.mrb[9].mxu1  ;;  %v2222_v6 = vld [vmem:[%s2623_s29 + $0x20] sm:$0xff] }
 0x259   : > { %2058 = vrcp.f32 %v1138_v7  ;;  %v1142_v17 = vadd.f32 1.0, %v2041_v10 }
 0x25a   : > { %v2043_v19 = vpop.eup %2042  ;;  %v1263_v8 = vmul.f32 %v2219_v21, %v1231_v13  ;;  %2060 = vpow2.f32 %v1716_v5  ;;  %v1717_v22 = vmul.f32 -1.442695, %v1018_v14 }
 0x25b   : > { %v2045_v24 = vpop.eup %2044  ;;  %2062 = vrcp.f32 %v1142_v17  ;;  %v1139_v25 = vadd.f32 1.0, %v2043_v19  ;;  %v893_v26 = vpop.f32.mrb[10].mxu1  ;;  %v2223_v19 = vld [vmem:[%s2623_s29 + $0x40] sm:$0xff] }
 0x25c   : > { %v2047_v12 = vpop.eup %2046  ;;  %v2767_v27 = vadd.f32 %v1263_v8, %v2737_v16  ;;  %v1232_v28 = vadd.f32 0.001, %v2045_v24  ;;  %2064 = vpow2.f32 %v1717_v22  ;;  %v1019_v29 = vadd.f32 2.0, %v893_v26  ;;  %v2769_v30 = vpop.f32.mrb[11].mxu1 }
 0x25d   : > { %2066 = vrcp.f32 %v1139_v25  ;;  %v1143_v33 = vadd.f32 1.0, %v2047_v12 }
 0x25e   : > { %v2049_v35 = vpop.eup %2048  ;;  %v1264_v37 = vmul.f32 %v2220_v36, %v1232_v28  ;;  %v1718_v38 = vmul.f32 -1.442695, %v1019_v29  ;;  %2068 = vlog2.f32 %v1231_v13  ;;  %v2224_v29 = vld [vmem:[%s2623_s29 + $0x28] sm:$0xff] }
 0x25f   : > { %v2051_v39 = vpop.eup %2050  ;;  %2070 = vrcp.f32 %v1143_v33  ;;  %v1140_v40 = vadd.f32 1.0, %v2049_v35  ;;  %v899_v16 = vpop.f32.mrb[12].mxu1 }
 0x260   : > { %v2053_v43 = vpop.eup %2052  ;;  %v2775_v44 = vadd.f32 %v1264_v37, %v2739_v20  ;;  %v1233_v45 = vadd.f32 0.001, %v2051_v39  ;;  %2072 = vpow2.f32 %v1718_v38  ;;  %v1020_v46 = vadd.f32 2.0, %v899_v16  ;;  %v2777_v47 = vpop.f32.mrb[13].mxu1 }
 0x261   : > { %v2055_v48 = vpop.eup %2054  ;;  %2074 = vrcp.f32 %v1140_v40  ;;  %v1144_v49 = vadd.f32 1.0, %v2053_v43  ;;  %v2225_v43 = vld [vmem:[%s2623_s29 + $0x48] sm:$0xff] }
 0x262   : > { %v2057_v50 = vpop.eup %2056  ;;  %v1265_v54 = vmul.f32 %v2221_v53, %v1233_v45  ;;  %v1719_v55 = vmul.f32 -1.442695, %v1020_v46  ;;  %v1330_v56 = vmul.f32 0.6931472, %v2055_v48  ;;  %2076 = vlog2.f32 %v1232_v28 }
 0x263   : > { %v2059_v57 = vpop.eup %2058  ;;  %2078 = vrcp.f32 %v1144_v49  ;;  %v1141_v20 = vadd.f32 1.0, %v2057_v50  ;;  %v905_v58 = vpop.f32.mrb[14].mxu1 }
 0x264   : > { %v2061_v59 = vpop.eup %2060  ;;  %v2782_v60 = vadd.f32 %v1265_v54, %v2741_v23  ;;  %v1234_v61 = vadd.f32 0.001, %v2059_v57  ;;  %2080 = vpow2.f32 %v1719_v55  ;;  %v1021_v62 = vadd.f32 2.0, %v905_v58  ;;  %v2784_v1 = vpop.f32.mrb[15].mxu1  ;;  %v2226_v55 = vld [vmem:[%s2623_s29 + $0x30] sm:$0xff] }
 0x265   : > { %v2063_v2 = vpop.eup %2062  ;;  %2082 = vrcp.f32 %v1141_v20  ;;  %v1145_v3 = vadd.f32 1.0, %v2061_v59  ;;  %v1393_v4 = vsel %vm1328_vm0, %v1330_v56, 0.0 }
 0x266   : > { %v2065_v5 = vpop.eup %2064  ;;  %v1266_v7 = vmul.f32 %v2222_v6, %v1234_v61  ;;  %v1238_v9 = vadd.f32 0.001, %v2063_v2  ;;  %v1720_v10 = vmul.f32 -1.442695, %v1021_v62  ;;  %1425 = vadd.xlane.f32.xlu0 %v1393_v4  ;;  %2084 = vlog2.f32 %v1233_v45 }
 0x267   : > { %v2067_v23 = vpop.eup %2066  ;;  %2086 = vrcp.f32 %v1145_v3  ;;  %v1146_v13 = vadd.f32 1.0, %v2065_v5  ;;  %v911_v14 = vpop.f32.mrb[16].mxu1  ;;  %v2227_v3 = vld [vmem:[%s2623_s29 + $0x50] sm:$0xff] }
 0x268   : > { %v2069_v17 = vpop.eup %2068  ;;  %v2790_v18 = vadd.f32 %v1266_v7, %v2743_v31  ;;  %v1270_v21 = vmul.f32 %v2223_v19, %v1238_v9  ;;  %v1235_v8 = vadd.f32 0.001, %v2067_v23  ;;  %2088 = vpow2.f32 %v1720_v10  ;;  %v2793_v22 = vpop.f32.mrb[17].mxu1 }
 0x269   : > { %v2071_v24 = vpop.eup %2070  ;;  %2090 = vrcp.f32 %v1146_v13  ;;  %v1022_v25 = vadd.f32 2.0, %v911_v14  ;;  %v1332_v26 = vmul.f32 0.6931472, %v2069_v17  ;;  %v2228_v13 = vld [vmem:[%s2623_s29 + $0x38] sm:$0xff] }
 0x26a   : > { %v2073_v12 = vpop.eup %2072  ;;  %v2796_v28 = vadd.f32 %v1270_v21, %v2745_v32  ;;  %v1267_v33 = vmul.f32 %v2224_v29, %v1235_v8  ;;  %v1239_v35 = vadd.f32 0.001, %v2071_v24  ;;  %2092 = vlog2.f32 %v1234_v61 }
 0x26b   : > { %v2075_v31 = vpop.eup %2074  ;;  %v1147_v36 = vadd.f32 1.0, %v2073_v12  ;;  %v1721_v37 = vmul.f32 -1.442695, %v1022_v25  ;;  %v1394_v38 = vsel %vm1328_vm0, %v1332_v26, 0.0  ;;  %v917_v39 = vpop.f32.mrb[18].mxu1  ;;  %2094 = vlog2.f32 %v1238_v9  ;;  %v2229_v12 = vld [vmem:[%s2623_s29 + $0x58] sm:$0xff] }
 0x26c   : > { %v2077_v40 = vpop.eup %2076  ;;  %v2802_v16 = vadd.f32 %v1267_v33, %v2747_v41  ;;  %v1271_v32 = vmul.f32 %v2225_v43, %v1239_v35  ;;  %v1236_v45 = vadd.f32 0.001, %v2075_v31  ;;  %1427 = vadd.xlane.f32.xlu0 %v1394_v38  ;;  %v1023_v46 = vadd.f32 2.0, %v917_v39  ;;  %v2805_v48 = vpop.f32.mrb[19].mxu1  ;;  %v2230_v39 = vld [vmem:[%s2623_s29 + $0x60] sm:$0xff] }
 0x26d   : > { %v2079_v49 = vpop.eup %2078  ;;  %2096 = vrcp.f32 %v1147_v36  ;;  %v1334_v50 = vmul.f32 0.6931472, %v2077_v40 }
 0x26e   : > { %v2081_v53 = vpop.eup %2080  ;;  %v2808_v54 = vadd.f32 %v1271_v32, %v2749_v42  ;;  %v1268_v56 = vmul.f32 %v2226_v55, %v1236_v45  ;;  %v1240_v57 = vadd.f32 0.001, %v2079_v49  ;;  %2098 = vpow2.f32 %v1721_v37 }
 0x26f   : > { %v2083_v41 = vpop.eup %2082  ;;  %v1148_v20 = vadd.f32 1.0, %v2081_v53  ;;  %v1722_v58 = vmul.f32 -1.442695, %v1023_v46  ;;  %v1395_v59 = vsel %vm1328_vm0, %v1334_v50, 0.0  ;;  %v923_v61 = vpop.f32.mrb[20].mxu1  ;;  %2100 = vlog2.f32 %v1235_v8 }
 0x270   : > { %v2085_v62 = vpop.eup %2084  ;;  %v2814_v2 = vadd.f32 %v1268_v56, %v2751_v51  ;;  %v1272_v42 = vmul.f32 %v2227_v3, %v1240_v57  ;;  %v1237_v4 = vadd.f32 0.001, %v2083_v41  ;;  %1429 = vadd.xlane.f32.xlu1 %v1395_v59  ;;  %v1024_v5 = vadd.f32 2.0, %v923_v61  ;;  %v2817_v6 = vpop.f32.mrb[21].mxu1 }
 0x271   : > { %v2087_v7 = vpop.eup %2086  ;;  %2102 = vrcp.f32 %v1148_v20  ;;  %v1336_v9 = vmul.f32 0.6931472, %v2085_v62  ;;  %v2231_v20 = vld [vmem:[%s2623_s29 + $0x68] sm:$0xff] }
 0x272   : > { %v2089_v10 = vpop.eup %2088  ;;  %v2820_v23 = vadd.f32 %v1272_v42, %v2753_v52  ;;  %v1269_v14 = vmul.f32 %v2228_v13, %v1237_v4  ;;  %v1241_v17 = vadd.f32 0.001, %v2087_v7  ;;  %2104 = vpow2.f32 %v1722_v58  ;;  %v2232_v13 = vld [vmem:[%s2623_s29 + $0x70] sm:$0xff] }
 0x273   : > { %v2091_v51 = vpop.eup %2090  ;;  %v1149_v19 = vadd.f32 1.0, %v2089_v10  ;;  %v1723_v21 = vmul.f32 -1.442695, %v1024_v5  ;;  %v1396_v8 = vsel %vm1328_vm0, %v1336_v9, 0.0  ;;  %v929_v24 = vpop.f32.mrb[22].mxu1  ;;  %2106 = vlog2.f32 %v1239_v35 }
 0x274   : > { %v2093_v25 = vpop.eup %2092  ;;  %v2826_v26 = vadd.f32 %v1269_v14, %v2755_v63  ;;  %v1273_v52 = vmul.f32 %v2229_v12, %v1241_v17  ;;  %v1242_v29 = vadd.f32 0.001, %v2091_v51  ;;  %1431 = vadd.xlane.f32.xlu1 %v1396_v8  ;;  %v1025_v33 = vadd.f32 2.0, %v929_v24  ;;  %v2829_v31 = vpop.f32.mrb[23].mxu1 }
 0x275   : > { %v2095_v36 = vpop.eup %2094  ;;  %2108 = vrcp.f32 %v1149_v19  ;;  %v1338_v37 = vmul.f32 0.6931472, %v2093_v25 }
 0x276   : > { %v2832_v38 = vadd.f32 %v1273_v52, %v2757_v0  ;;  %v1274_v40 = vmul.f32 %v2230_v39, %v1242_v29  ;;  %2110 = vpow2.f32 %v1723_v21  ;;  %v1724_v35 = vmul.f32 -1.442695, %v1025_v33 }
 0x277   : > { %v2097_v63 = vpop.eup %2096  ;;  %v1397_v43 = vsel %vm1328_vm0, %v1338_v37, 0.0  ;;  %v935_v32 = vpop.f32.mrb[24].mxu1  ;;  %v1346_v46 = vmul.f32 0.6931472, %v2095_v36  ;;  %2112 = vlog2.f32 %v1236_v45  ;;  %v2233_v37 = vld [vmem:[%s2623_s29 + $0x78] sm:$0xff] }
 0x278   : > { %v2099_v49 = vpop.eup %2098  ;;  %v2838_v50 = vadd.f32 %v1274_v40, %v2763_v15  ;;  %v1243_v53 = vadd.f32 0.001, %v2097_v63  ;;  %2114 = vpow2.f32 %v1724_v35  ;;  %1433 = vadd.xlane.f32.xlu0 %v1397_v43  ;;  %v1026_v0 = vadd.f32 2.0, %v935_v32  ;;  %v2840_v55 = vpop.f32.mrb[25].mxu1 }
 0x279   : > { %v2101_v56 = vpop.eup %2100  ;;  %v1150_v41 = vadd.f32 1.0, %v2099_v49  ;;  %2116 = vlog2.f32 %v1240_v57  ;;  %v1401_v15 = vsel %vm1328_vm0, %v1346_v46, 0.0 }
 0x27a   : > { %v1275_v58 = vmul.f32 %v2231_v20, %v1243_v53  ;;  %v1725_v59 = vmul.f32 -1.442695, %v1026_v0  ;;  %v1340_v61 = vmul.f32 0.6931472, %v2101_v56  ;;  %2118 = vlog2.f32 %v1237_v4 }
 0x27b   : > { %v2103_v62 = vpop.eup %2102  ;;  %2120 = vrcp.f32 %v1150_v41  ;;  %v941_v45 = vpop.f32.mrb[26].mxu1 }
 0x27c   : > { %v2105_v3 = vpop.eup %2104  ;;  %v2846_v42 = vadd.f32 %v1275_v58, %v2769_v30  ;;  %v1244_v5 = vadd.f32 0.001, %v2103_v62  ;;  %2122 = vpow2.f32 %v1725_v59  ;;  %1441 = vadd.xlane.f32.xlu0 %v1401_v15  ;;  %v1398_v57 = vsel %vm1328_vm0, %v1340_v61, 0.0  ;;  %v2850_v7 = vpop.f32.mrb[27].mxu1 }
 0x27d   : > { %v2107_v4 = vpop.eup %2106  ;;  %v1151_v9 = vadd.f32 1.0, %v2105_v3  ;;  %1435 = vadd.xlane.f32.xlu1 %v1398_v57  ;;  %v1027_v10 = vadd.f32 2.0, %v941_v45  ;;  %2124 = vlog2.f32 %v1242_v29 }
 0x27e   : > { %v1276_v14 = vmul.f32 %v2232_v13, %v1244_v5  ;;  %v1348_v51 = vmul.f32 0.6931472, %v2107_v4  ;;  %2126 = vlog2.f32 %v1241_v17  ;;  %v2234_v4 = vld [vmem:[%s2623_s29 + $0x80] sm:$0xff] }
 0x27f   : > { %v2109_v30 = vpop.eup %2108  ;;  %2128 = vrcp.f32 %v1151_v9  ;;  %v1726_v19 = vmul.f32 -1.442695, %v1027_v10  ;;  %v947_v21 = vpop.f32.mrb[28].mxu1 }
 0x280   : > { %v2111_v8 = vpop.eup %2110  ;;  %v2854_v24 = vadd.f32 %v1276_v14, %v2777_v47  ;;  %v1245_v25 = vadd.f32 0.001, %v2109_v30  ;;  %v1402_v12 = vsel %vm1328_vm0, %v1348_v51, 0.0  ;;  %v1028_v52 = vadd.f32 2.0, %v947_v21  ;;  %v2858_v33 = vpop.f32.mrb[29].mxu1 }
 0x281   : > { %v2113_v29 = vpop.eup %2112  ;;  %v1152_v36 = vadd.f32 1.0, %v2111_v8  ;;  %2130 = vpow2.f32 %v1726_v19  ;;  %1443 = vadd.xlane.f32.xlu1 %v1402_v12 }
 0x282   : > { %v2115_v17 = vpop.eup %2114  ;;  %v1277_v39 = vmul.f32 %v2233_v37, %v1245_v25  ;;  %v1342_v40 = vmul.f32 0.6931472, %v2113_v29  ;;  %v1727_v35 = vmul.f32 -1.442695, %v1028_v52  ;;  %2132 = vlog2.f32 %v1243_v53 }
 0x283   : > { %v2117_v63 = vpop.eup %2116  ;;  %2134 = vrcp.f32 %v1152_v36  ;;  %v1153_v47 = vadd.f32 1.0, %v2115_v17  ;;  %v953_v43 = vpop.f32.mrb[30].mxu1  ;;  %v2235_v36 = vld [vmem:[%s2623_s29 + $0x88] sm:$0xff] }
 0x284   : > { %v2119_v32 = vpop.eup %2118  ;;  %v2862_v46 = vadd.f32 %v1277_v39, %v2784_v1  ;;  %v1399_v49 = vsel %vm1328_vm0, %v1342_v40, 0.0  ;;  %2136 = vpow2.f32 %v1727_v35  ;;  %v1350_v0 = vmul.f32 0.6931472, %v2117_v63  ;;  %v2866_v56 = vpop.f32.mrb[31].mxu1 }
 0x285   : > { %v2121_v41 = vpop.eup %2120  ;;  %2138 = vrcp.f32 %v1153_v47  ;;  %1437 = vadd.xlane.f32.xlu0 %v1399_v49  ;;  %v1344_v53 = vmul.f32 0.6931472, %v2119_v32  ;;  %v1029_v20 = vadd.f32 2.0, %v953_v43 }
 0x286   : > { %v2123_v58 = vpop.eup %2122  ;;  %v1246_v59 = vadd.f32 0.001, %v2121_v41  ;;  %v1403_v61 = vsel %vm1328_vm0, %v1350_v0, 0.0  ;;  %2140 = vlog2.f32 %v1244_v5 }
 0x287   : > { %v2125_v1 = vpop.eup %2124  ;;  %v1154_v62 = vadd.f32 1.0, %v2123_v58  ;;  %v1400_v15 = vsel %vm1328_vm0, %v1344_v53, 0.0  ;;  %v1728_v45 = vmul.f32 -1.442695, %v1029_v20  ;;  %v959_v3 = vpop.f32.mrb[32].mxu1  ;;  %2142 = vlog2.f32 %v1245_v25  ;;  %v2236_v58 = vld [vmem:[%s2623_s29 + $0x90] sm:$0xff] }
 0x288   : > { %v2127_v57 = vpop.eup %2126  ;;  %v1278_v9 = vmul.f32 %v2234_v4, %v1246_v59  ;;  %1439 = vadd.xlane.f32.xlu1 %v1400_v15  ;;  %v1354_v10 = vmul.f32 0.6931472, %v2125_v1  ;;  %v1030_v13 = vadd.f32 2.0, %v959_v3  ;;  %v2873_v14 = vpop.f32.mrb[33].mxu1  ;;  %2144 = vlog2.f32 %v1246_v59 }
 0x289   : > { %v2129_v51 = vpop.eup %2128  ;;  %2146 = vrcp.f32 %v1154_v62  ;;  %1445 = vadd.xlane.f32.xlu0 %v1403_v61  ;;  %v1352_v5 = vmul.f32 0.6931472, %v2127_v57  ;;  %v2237_v57 = vld [vmem:[%s2623_s29 + $0x98] sm:$0xff] }
 0x28a   : > { %v2876_v30 = vadd.f32 %v1278_v9, %v2793_v22  ;;  %v1247_v19 = vadd.f32 0.001, %v2129_v51  ;;  %2148 = vpow2.f32 %v1728_v45  ;;  %v1405_v21 = vsel %vm1328_vm0, %v1354_v10, 0.0 }
 0x28b   : > { %v2131_v8 = vpop.eup %2130  ;;  %v1404_v25 = vsel %vm1328_vm0, %v1352_v5, 0.0  ;;  %v1729_v12 = vmul.f32 -1.442695, %v1030_v13  ;;  %v965_v52 = vpop.f32.mrb[34].mxu1 }
 0x28c   : > { %v2133_v29 = vpop.eup %2132  ;;  %v1279_v17 = vmul.f32 %v2235_v36, %v1247_v19  ;;  %v1155_v37 = vadd.f32 1.0, %v2131_v8  ;;  %1447 = vadd.xlane.f32.xlu1 %v1404_v25  ;;  %v1031_v39 = vadd.f32 2.0, %v965_v52  ;;  %v2883_v40 = vpop.f32.mrb[35].mxu1  ;;  %2150 = vlog2.f32 %v1247_v19 }
 0x28d   : > { %v2135_v22 = vpop.eup %2134  ;;  %1449 = vadd.xlane.f32.xlu0 %v1405_v21  ;;  %2152 = vpow2.f32 %v1729_v12  ;;  %v1356_v35 = vmul.f32 0.6931472, %v2133_v29 }
 0x28e   : > { %v2137_v63 = vpop.eup %2136  ;;  %v2886_v47 = vadd.f32 %v1279_v17, %v2805_v48  ;;  %v1248_v43 = vadd.f32 0.001, %v2135_v22  ;;  %2154 = vrcp.f32 %v1155_v37  ;;  %v1730_v32 = vmul.f32 -1.442695, %v1031_v39  ;;  %v2238_v37 = vld [vmem:[%s2623_s29 + $0xa0] sm:$0xff] }
 0x28f   : > { %v2139_v49 = vpop.eup %2138  ;;  %v1156_v0 = vadd.f32 1.0, %v2137_v63  ;;  %v1406_v41 = vsel %vm1328_vm0, %v1356_v35, 0.0  ;;  %v971_v53 = vpop.f32.mrb[36].mxu1 }
 0x290   : > { %v2141_v20 = vpop.eup %2140  ;;  %v1280_v59 = vmul.f32 %v2236_v58, %v1248_v43  ;;  %v1249_v61 = vadd.f32 0.001, %v2139_v49  ;;  %1451 = vadd.xlane.f32.xlu1 %v1406_v41  ;;  %2156 = vpow2.f32 %v1730_v32  ;;  %v1032_v1 = vadd.f32 2.0, %v971_v53  ;;  %v2891_v62 = vpop.f32.mrb[37].mxu1 }
 0x291   : > { %v2143_v48 = vpop.eup %2142  ;;  %2158 = vrcp.f32 %v1156_v0  ;;  %v1358_v15 = vmul.f32 0.6931472, %v2141_v20 }
 0x292   : > { %v2145_v45 = vpop.eup %2144  ;;  %v2894_v3 = vadd.f32 %v1280_v59, %v2817_v6  ;;  %v1281_v4 = vmul.f32 %v2237_v57, %v1249_v61  ;;  %v1731_v9 = vmul.f32 -1.442695, %v1032_v1  ;;  %v1360_v10 = vmul.f32 0.6931472, %v2143_v48  ;;  %v2239_v1 = vld [vmem:[%s2623_s29 + $0xa8] sm:$0xff] }
 0x293   : > { %v2147_v13 = vpop.eup %2146  ;;  %v1407_v51 = vsel %vm1328_vm0, %v1358_v15, 0.0  ;;  %v977_v5 = vpop.f32.mrb[38].mxu1  ;;  %v1362_v19 = vmul.f32 0.6931472, %v2145_v45  ;;  %2160 = vlog2.f32 %v1248_v43 }
 0x294   : > { %v2149_v21 = vpop.eup %2148  ;;  %v2900_v8 = vadd.f32 %v1281_v4, %v2829_v31  ;;  %v1250_v25 = vadd.f32 0.001, %v2147_v13  ;;  %1453 = vadd.xlane.f32.xlu0 %v1407_v51  ;;  %2162 = vpow2.f32 %v1731_v9  ;;  %v1408_v6 = vsel %vm1328_vm0, %v1360_v10, 0.0  ;;  %v2904_v12 = vpop.f32.mrb[39].mxu1  ;;  %v2240_v51 = vld [vmem:[%s2623_s29 + $0xb0] sm:$0xff] }
 0x295   : > { %v1157_v52 = vadd.f32 1.0, %v2149_v21  ;;  %1455 = vadd.xlane.f32.xlu1 %v1408_v6  ;;  %v1033_v29 = vadd.f32 2.0, %v977_v5  ;;  %v1409_v36 = vsel %vm1328_vm0, %v1362_v19, 0.0  ;;  %2164 = vlog2.f32 %v1249_v61 }
 0x296   : > { %v2151_v17 = vpop.eup %2150  ;;  %v1282_v39 = vmul.f32 %v2238_v37, %v1250_v25  ;;  %2166 = vlog2.f32 %v1250_v25 }
 0x297   : > { %v2153_v31 = vpop.eup %2152  ;;  %2168 = vrcp.f32 %v1157_v52  ;;  %v1732_v22 = vmul.f32 -1.442695, %v1033_v29  ;;  %v983_v35 = vpop.f32.mrb[40].mxu1  ;;  %v1364_v63 = vmul.f32 0.6931472, %v2151_v17 }
 0x298   : > { %v2155_v43 = vpop.eup %2154  ;;  %v2910_v32 = vadd.f32 %v1282_v39, %v2840_v55  ;;  %v1158_v49 = vadd.f32 1.0, %v2153_v31  ;;  %1457 = vadd.xlane.f32.xlu0 %v1409_v36  ;;  %v1034_v0 = vadd.f32 2.0, %v983_v35  ;;  %v2912_v41 = vpop.f32.mrb[41].mxu1 }
 0x299   : > { %v1251_v53 = vadd.f32 0.001, %v2155_v43  ;;  %2170 = vpow2.f32 %v1732_v22  ;;  %v1410_v20 = vsel %vm1328_vm0, %v1364_v63, 0.0 }
 0x29a   : > { %v2157_v58 = vpop.eup %2156  ;;  %2172 = vrcp.f32 %v1158_v49  ;;  %v1733_v59 = vmul.f32 -1.442695, %v1034_v0  ;;  %1459 = vadd.xlane.f32.xlu1 %v1410_v20  ;;  %v2241_v20 = vld [vmem:[%s2623_s29 + $0xb8] sm:$0xff] }
 0x29b   : > { %v2159_v61 = vpop.eup %2158  ;;  %v1283_v48 = vmul.f32 %v2239_v1, %v1251_v53  ;;  %v1159_v55 = vadd.f32 1.0, %v2157_v58  ;;  %v989_v15 = vpop.f32.mrb[42].mxu1  ;;  %2174 = vlog2.f32 %v1251_v53 }
 0x29c   : > { %v1252_v45 = vadd.f32 0.001, %v2159_v61  ;;  %2176 = vpow2.f32 %v1733_v59  ;;  %v1035_v57 = vadd.f32 2.0, %v989_v15  ;;  %v2917_v4 = vpop.f32.mrb[43].mxu1 }
 0x29d   : > { %v2161_v9 = vpop.eup %2160  ;;  %v2920_v10 = vadd.f32 %v1283_v48, %v2850_v7  ;;  %2178 = vrcp.f32 %v1159_v55 }
 0x29e   : > { %v2163_v13 = vpop.eup %2162  ;;  %v1284_v5 = vmul.f32 %v2240_v51, %v1252_v45  ;;  %v1734_v19 = vmul.f32 -1.442695, %v1035_v57  ;;  %v1366_v21 = vmul.f32 0.6931472, %v2161_v9  ;;  %2180 = vlog2.f32 %v1252_v45  ;;  %v2242_v51 = vld [vmem:[%s2623_s29 + $0xc0] sm:$0xff] }
 0x29f   : > { %v2165_v25 = vpop.eup %2164  ;;  %v1160_v6 = vadd.f32 1.0, %v2163_v13  ;;  %v995_v52 = vpop.f32.mrb[44].mxu1 }
 0x2a0   : > { %v2167_v29 = vpop.eup %2166  ;;  %v2924_v36 = vadd.f32 %v1284_v5, %v2858_v33  ;;  %2182 = vpow2.f32 %v1734_v19  ;;  %v1411_v7 = vsel %vm1328_vm0, %v1366_v21, 0.0  ;;  %v1036_v17 = vadd.f32 2.0, %v995_v52  ;;  %v2928_v37 = vpop.f32.mrb[45].mxu1 }
 0x2a1   : > { %v2169_v39 = vpop.eup %2168  ;;  %2184 = vrcp.f32 %v1160_v6  ;;  %1461 = vadd.xlane.f32.xlu0 %v1411_v7  ;;  %v1368_v31 = vmul.f32 0.6931472, %v2165_v25  ;;  %v1370_v22 = vmul.f32 0.6931472, %v2167_v29  ;;  %v2243_v7 = vld [vmem:[%s2623_s29 + $0xc8] sm:$0xff] }
 0x2a2   : > { %v1253_v35 = vadd.f32 0.001, %v2169_v39  ;;  %v1735_v63 = vmul.f32 -1.442695, %v1036_v17 }
 0x2a3   : > { %v2171_v43 = vpop.eup %2170  ;;  %v1412_v33 = vsel %vm1328_vm0, %v1368_v31, 0.0  ;;  %v1001_v49 = vpop.f32.mrb[46].mxu1  ;;  %v1413_v0 = vsel %vm1328_vm0, %v1370_v22, 0.0 }
 0x2a4   : > { %v2173_v53 = vpop.eup %2172  ;;  %v1285_v58 = vmul.f32 %v2241_v20, %v1253_v35  ;;  %v1161_v59 = vadd.f32 1.0, %v2171_v43  ;;  %2186 = vpow2.f32 %v1735_v63  ;;  %1463 = vadd.xlane.f32.xlu1 %v1412_v33  ;;  %v1037_v61 = vadd.f32 2.0, %v1001_v49  ;;  %v2935_v1 = vpop.f32.mrb[47].mxu1  ;;  %v2244_v43 = vld [vmem:[%s2623_s29 + $0xd0] sm:$0xff] }
 0x2a5   : > { %v2175_v48 = vpop.eup %2174  ;;  %v1254_v55 = vadd.f32 0.001, %v2173_v53  ;;  %1465 = vadd.xlane.f32.xlu0 %v1413_v0  ;;  %2188 = vlog2.f32 %v1253_v35 }
 0x2a6   : > { %v2177_v15 = vpop.eup %2176  ;;  %v2938_v45 = vadd.f32 %v1285_v58, %v2866_v56  ;;  %2190 = vrcp.f32 %v1161_v59  ;;  %v1736_v57 = vmul.f32 -1.442695, %v1037_v61  ;;  %v1372_v9 = vmul.f32 0.6931472, %v2175_v48 }
 0x2a7   : > { %v2179_v13 = vpop.eup %2178  ;;  %v1286_v5 = vmul.f32 %v2242_v51, %v1254_v55  ;;  %v1162_v19 = vadd.f32 1.0, %v2177_v15  ;;  %2192 = vlog2.f32 %v1254_v55 }
 0x2a8   : > { %v2181_v21 = vpop.eup %2180  ;;  %v1255_v25 = vadd.f32 0.001, %v2179_v13  ;;  %2194 = vpow2.f32 %v1736_v57  ;;  %v1414_v6 = vsel %vm1328_vm0, %v1372_v9, 0.0  ;;  %v2245_v57 = vld [vmem:[%s2623_s29 + $0xd8] sm:$0xff] }
 0x2a9   : > { %v2944_v52 = vadd.f32 %v1286_v5, %v2873_v14  ;;  %2196 = vrcp.f32 %v1162_v19  ;;  %1467 = vadd.xlane.f32.xlu1 %v1414_v6  ;;  %v1374_v56 = vmul.f32 0.6931472, %v2181_v21 }
 0x2aa   : > { %v2183_v29 = vpop.eup %2182  ;;  %v1287_v17 = vmul.f32 %v2243_v7, %v1255_v25  ;;  %2198 = vlog2.f32 %v1255_v25  ;;  %v2246_v25 = vld [vmem:[%s2623_s29 + $0xe0] sm:$0xff] }
 0x2ab   : > { %v2185_v39 = vpop.eup %2184  ;;  %v1163_v31 = vadd.f32 1.0, %v2183_v29  ;;  %v1415_v22 = vsel %vm1328_vm0, %v1374_v56, 0.0 }
 0x2ac   : > { %v2950_v35 = vadd.f32 %v1287_v17, %v2883_v40  ;;  %v1256_v63 = vadd.f32 0.001, %v2185_v39  ;;  %1469 = vadd.xlane.f32.xlu0 %v1415_v22 }
 0x2ad   : > { %2200 = vrcp.f32 %v1163_v31 }
 0x2ae   : > { %v2187_v14 = vpop.eup %2186  ;;  %v1288_v33 = vmul.f32 %v2244_v43, %v1256_v63  ;;  %2202 = vlog2.f32 %v1256_v63 }
 0x2af   : > { %v2189_v49 = vpop.eup %2188  ;;  %v1164_v0 = vadd.f32 1.0, %v2187_v14 }
 0x2b0   : > { %v2191_v53 = vpop.eup %2190  ;;  %v2954_v20 = vadd.f32 %v1288_v33, %v2891_v62  ;;  %v1376_v58 = vmul.f32 0.6931472, %v2189_v49 }
 0x2b1   : > { %v2193_v59 = vpop.eup %2192  ;;  %v1257_v61 = vadd.f32 0.001, %v2191_v53  ;;  %2204 = vrcp.f32 %v1164_v0  ;;  %v2248_v0 = vld [vmem:[%s2623_s29 + $0xf0] sm:$0xff] }
 0x2b2   : > { %v2195_v40 = vpop.eup %2194  ;;  %v1416_v48 = vsel %vm1328_vm0, %v1376_v58, 0.0  ;;  %v1378_v55 = vmul.f32 0.6931472, %v2193_v59 }
 0x2b3   : > { %v2197_v15 = vpop.eup %2196  ;;  %v1289_v9 = vmul.f32 %v2245_v57, %v1257_v61  ;;  %v1165_v13 = vadd.f32 1.0, %v2195_v40  ;;  %1471 = vadd.xlane.f32.xlu1 %v1416_v48  ;;  %2206 = vlog2.f32 %v1257_v61 }
 0x2b4   : > { %v2199_v51 = vpop.eup %2198  ;;  %v1258_v5 = vadd.f32 0.001, %v2197_v15  ;;  %v1417_v62 = vsel %vm1328_vm0, %v1378_v55, 0.0 }
 0x2b5   : > { %v2962_v19 = vadd.f32 %v1289_v9, %v2904_v12  ;;  %2208 = vrcp.f32 %v1165_v13  ;;  %1473 = vadd.xlane.f32.xlu0 %v1417_v62  ;;  %v1380_v21 = vmul.f32 0.6931472, %v2199_v51  ;;  %v2247_v12 = vld [vmem:[%s2623_s29 + $0xe8] sm:$0xff] }
 0x2b6   : > { %v1290_v6 = vmul.f32 %v2246_v25, %v1258_v5  ;;  %2210 = vlog2.f32 %v1258_v5 }
 0x2b7   : > { %v2201_v56 = vpop.eup %2200  ;;  %v1418_v29 = vsel %vm1328_vm0, %v1380_v21, 0.0 }
 0x2b8   : > { %v2203_v7 = vpop.eup %2202  ;;  %v2968_v17 = vadd.f32 %v1290_v6, %v2912_v41  ;;  %v1259_v39 = vadd.f32 0.001, %v2201_v56  ;;  %1475 = vadd.xlane.f32.xlu1 %v1418_v29 }
 0x2b9   : > { %v1382_v31 = vmul.f32 0.6931472, %v2203_v7 }
 0x2ba   : > { %v1291_v22 = vmul.f32 %v2247_v12, %v1259_v39  ;;  %2212 = vlog2.f32 %v1259_v39 }
 0x2bb   : > { %v2205_v63 = vpop.eup %2204  ;;  %v1419_v14 = vsel %vm1328_vm0, %v1382_v31, 0.0 }
 0x2bc   : > { %v2974_v43 = vadd.f32 %v1291_v22, %v2917_v4  ;;  %v1260_v33 = vadd.f32 0.001, %v2205_v63  ;;  %1477 = vadd.xlane.f32.xlu0 %v1419_v14  ;;  %v2249_v4 = vld [vmem:[%s2623_s29 + $0xf8] sm:$0xff] }
 0x2bd   : > { %v2207_v49 = vpop.eup %2206 }
 0x2be   : > { %v1292_v41 = vmul.f32 %v2248_v0, %v1260_v33  ;;  %v1384_v53 = vmul.f32 0.6931472, %v2207_v49  ;;  %2214 = vlog2.f32 %v1260_v33 }
 0x2bf   : > { %v2209_v58 = vpop.eup %2208 }
 0x2c0   : > { %v2211_v59 = vpop.eup %2210  ;;  %v2978_v61 = vadd.f32 %v1292_v41, %v2928_v37  ;;  %v1261_v40 = vadd.f32 0.001, %v2209_v58  ;;  %v1420_v48 = vsel %vm1328_vm0, %v1384_v53, 0.0 }
 0x2c1   : > { %1479 = vadd.xlane.f32.xlu1 %v1420_v48  ;;  %v1386_v55 = vmul.f32 0.6931472, %v2211_v59 }
 0x2c2   : > { %v1293_v15 = vmul.f32 %v2249_v4, %v1261_v40  ;;  %2216 = vlog2.f32 %v1261_v40 }
 0x2c3   : > { %v1421_v57 = vsel %vm1328_vm0, %v1386_v55, 0.0 }
 0x2c4   : > { %v2213_v9 = vpop.eup %2212  ;;  %v2986_v13 = vadd.f32 %v1293_v15, %v2935_v1  ;;  %1481 = vadd.xlane.f32.xlu0 %v1421_v57 }
 0x2c5   : > { %v1388_v37 = vmul.f32 0.6931472, %v2213_v9 }
 0x2c7   : > { %v1422_v51 = vsel %vm1328_vm0, %v1388_v37, 0.0 }
 0x2c8   : > { %v2215_v5 = vpop.eup %2214  ;;  %1483 = vadd.xlane.f32.xlu1 %v1422_v51 }
 0x2c9   : > { %v1390_v62 = vmul.f32 0.6931472, %v2215_v5 }
 0x2cb   : > { %v1423_v21 = vsel %vm1328_vm0, %v1390_v62, 0.0 }
 0x2cc   : > { %v2217_v25 = vpop.eup %2216  ;;  %1485 = vadd.xlane.f32.xlu0 %v1423_v21 }
 0x2cd   : > { %v1392_v6 = vmul.f32 0.6931472, %v2217_v25 }
 0x2cf   : > { %v1424_v56 = vsel %vm1328_vm0, %v1392_v6, 0.0 }
 0x2d0   : > { %1487 = vadd.xlane.f32.xlu1 %v1424_v56 }
 0x2f3   : > { %v1426_v1 = vpop.xlane.xlu0 %1425 }
 0x2f4   : > { %v1490_v29 = vsel %vm1489_vm1, %v1426_v1, 0.0 }
 0x2f5   : > { %v1522_v7 = vsel %vm1328_vm0, %v2761_v11, %v1490_v29 }
 0x2f6   : > { %1554 = vst [vmem:[%s3002_s18] sm:$0xff] %v1522_v7 }
 0x2f9   : > { %v1428_v39 = vpop.xlane.xlu0 %1427 }
 0x2fa   : > { %v1491_v31 = vsel %vm1489_vm1, %v1428_v39, 0.0 }
 0x2fb   : > { %v1523_v12 = vsel %vm1328_vm0, %v2767_v27, %v1491_v31 }
 0x2fc   : > { %1555 = vst [vmem:[%s3002_s18 + $0x8] sm:$0xff] %v1523_v12 }
 0x2fd   : > { %v1430_v22 = vpop.xlane.xlu1 %1429 }
 0x2fe   : > { %v1492_v11 = vsel %vm1489_vm1, %v1430_v22, 0.0 }
 0x2ff   : > { %v1524_v63 = vsel %vm1328_vm0, %v2775_v44, %v1492_v11 }
 0x300   : > { %1556 = vst [vmem:[%s3002_s18 + $0x10] sm:$0xff] %v1524_v63 }
 0x301   : > { %v1432_v14 = vpop.xlane.xlu1 %1431 }
 0x302   : > { %v1493_v33 = vsel %vm1489_vm1, %v1432_v14, 0.0 }
 0x303   : > { %v1525_v27 = vsel %vm1328_vm0, %v2782_v60, %v1493_v33 }
 0x304   : > { %1557 = vst [vmem:[%s3002_s18 + $0x18] sm:$0xff] %v1525_v27 }
 0x305   : > { %v1434_v49 = vpop.xlane.xlu0 %1433 }
 0x306   : > { %v1494_v0 = vsel %vm1489_vm1, %v1434_v49, 0.0 }
 0x307   : > { %v1526_v44 = vsel %vm1328_vm0, %v2790_v18, %v1494_v0 }
 0x308   : > { %1558 = vst [vmem:[%s3002_s18 + $0x20] sm:$0xff] %v1526_v44 }
 0x309   : > { %v1442_v41 = vpop.xlane.xlu0 %1441 }
 0x30a   : > { %v1498_v53 = vsel %vm1489_vm1, %v1442_v41, 0.0  ;;  %v1436_v58 = vpop.xlane.xlu1 %1435 }
 0x30b   : > { %v1530_v60 = vsel %vm1328_vm0, %v2796_v28, %v1498_v53  ;;  %v1495_v59 = vsel %vm1489_vm1, %v1436_v58, 0.0 }
 0x30c   : > { %1562 = vst [vmem:[%s3002_s18 + $0x40] sm:$0xff] %v1530_v60  ;;  %v1527_v40 = vsel %vm1328_vm0, %v2802_v16, %v1495_v59 }
 0x30d   : > { %1559 = vst [vmem:[%s3002_s18 + $0x28] sm:$0xff] %v1527_v40 }
 0x30e   : > { %v1444_v18 = vpop.xlane.xlu1 %1443 }
 0x30f   : > { %v1499_v48 = vsel %vm1489_vm1, %v1444_v18, 0.0 }
 0x310   : > { %v1531_v55 = vsel %vm1328_vm0, %v2808_v54, %v1499_v48 }
 0x311   : > { %1563 = vst [vmem:[%s3002_s18 + $0x48] sm:$0xff] %v1531_v55 }
 0x312   : > { %v1438_v28 = vpop.xlane.xlu0 %1437 }
 0x313   : > { %v1496_v4 = vsel %vm1489_vm1, %v1438_v28, 0.0 }
 0x314   : > { %v1528_v16 = vsel %vm1328_vm0, %v2814_v2, %v1496_v4 }
 0x315   : > { %1560 = vst [vmem:[%s3002_s18 + $0x30] sm:$0xff] %v1528_v16  ;;  %v1440_v15 = vpop.xlane.xlu1 %1439 }
 0x316   : > { %v1446_v57 = vpop.xlane.xlu0 %1445  ;;  %v1497_v9 = vsel %vm1489_vm1, %v1440_v15, 0.0 }
 0x317   : > { %v1500_v54 = vsel %vm1489_vm1, %v1446_v57, 0.0  ;;  %v1529_v37 = vsel %vm1328_vm0, %v2826_v26, %v1497_v9 }
 0x318   : > { %v1532_v2 = vsel %vm1328_vm0, %v2820_v23, %v1500_v54  ;;  %1561 = vst [vmem:[%s3002_s18 + $0x38] sm:$0xff] %v1529_v37 }
 0x319   : > { %1564 = vst [vmem:[%s3002_s18 + $0x50] sm:$0xff] %v1532_v2  ;;  %v1448_v51 = vpop.xlane.xlu1 %1447 }
 0x31a   : > { %v1450_v5 = vpop.xlane.xlu0 %1449  ;;  %v1501_v62 = vsel %vm1489_vm1, %v1448_v51, 0.0 }
 0x31b   : > { %v1502_v21 = vsel %vm1489_vm1, %v1450_v5, 0.0  ;;  %v1533_v26 = vsel %vm1328_vm0, %v2832_v38, %v1501_v62 }
 0x31c   : > { %v1534_v23 = vsel %vm1328_vm0, %v2838_v50, %v1502_v21  ;;  %1565 = vst [vmem:[%s3002_s18 + $0x58] sm:$0xff] %v1533_v26 }
 0x31d   : > { %1566 = vst [vmem:[%s3002_s18 + $0x60] sm:$0xff] %v1534_v23  ;;  %v1452_v25 = vpop.xlane.xlu1 %1451 }
 0x31e   : > { %v1503_v6 = vsel %vm1489_vm1, %v1452_v25, 0.0 }
 0x31f   : > { %v1535_v56 = vsel %vm1328_vm0, %v2846_v42, %v1503_v6 }
 0x320   : > { %1567 = vst [vmem:[%s3002_s18 + $0x68] sm:$0xff] %v1535_v56 }
 0x321   : > { %v1454_v1 = vpop.xlane.xlu0 %1453 }
 0x322   : > { %v1504_v38 = vsel %vm1489_vm1, %v1454_v1, 0.0  ;;  %v1456_v29 = vpop.xlane.xlu1 %1455 }
 0x323   : > { %v1536_v50 = vsel %vm1328_vm0, %v2854_v24, %v1504_v38  ;;  %v1505_v7 = vsel %vm1489_vm1, %v1456_v29, 0.0 }
 0x324   : > { %1568 = vst [vmem:[%s3002_s18 + $0x70] sm:$0xff] %v1536_v50  ;;  %v1537_v42 = vsel %vm1328_vm0, %v2862_v46, %v1505_v7 }
 0x325   : > { %1569 = vst [vmem:[%s3002_s18 + $0x78] sm:$0xff] %v1537_v42  ;;  %v1458_v39 = vpop.xlane.xlu0 %1457 }
 0x326   : > { %v1506_v31 = vsel %vm1489_vm1, %v1458_v39, 0.0 }
 0x327   : > { %v1538_v12 = vsel %vm1328_vm0, %v2876_v30, %v1506_v31  ;;  %v1460_v24 = vpop.xlane.xlu1 %1459 }
 0x328   : > { %1570 = vst [vmem:[%s3002_s18 + $0x80] sm:$0xff] %v1538_v12  ;;  %v1507_v22 = vsel %vm1489_vm1, %v1460_v24, 0.0 }
 0x329   : > { %v1539_v46 = vsel %vm1328_vm0, %v2886_v47, %v1507_v22 }
 0x32a   : > { %1571 = vst [vmem:[%s3002_s18 + $0x88] sm:$0xff] %v1539_v46 }
 0x32e   : > { %v1462_v11 = vpop.xlane.xlu0 %1461 }
 0x32f   : > { %v1508_v63 = vsel %vm1489_vm1, %v1462_v11, 0.0 }
 0x330   : > { %v1540_v30 = vsel %vm1328_vm0, %v2894_v3, %v1508_v63 }
 0x331   : > { %1572 = vst [vmem:[%s3002_s18 + $0x90] sm:$0xff] %v1540_v30  ;;  %v1464_v14 = vpop.xlane.xlu1 %1463 }
 0x332   : > { %v1509_v33 = vsel %vm1489_vm1, %v1464_v14, 0.0  ;;  %v1466_v27 = vpop.xlane.xlu0 %1465 }
 0x333   : > { %v1541_v47 = vsel %vm1328_vm0, %v2900_v8, %v1509_v33  ;;  %v1510_v49 = vsel %vm1489_vm1, %v1466_v27, 0.0 }
 0x334   : > { %1573 = vst [vmem:[%s3002_s18 + $0x98] sm:$0xff] %v1541_v47  ;;  %v1542_v3 = vsel %vm1328_vm0, %v2910_v32, %v1510_v49 }
 0x335   : > { %1574 = vst [vmem:[%s3002_s18 + $0xa0] sm:$0xff] %v1542_v3 }
 0x336   : > { %v1468_v0 = vpop.xlane.xlu1 %1467 }
 0x337   : > { %v1511_v44 = vsel %vm1489_vm1, %v1468_v0, 0.0 }
 0x338   : > { %v1543_v41 = vsel %vm1328_vm0, %v2920_v10, %v1511_v44 }
 0x339   : > { %1575 = vst [vmem:[%s3002_s18 + $0xa8] sm:$0xff] %v1543_v41  ;;  %v1470_v8 = vpop.xlane.xlu0 %1469 }
 0x33a   : > { %v1512_v53 = vsel %vm1489_vm1, %v1470_v8, 0.0 }
 0x33b   : > { %v1544_v32 = vsel %vm1328_vm0, %v2924_v36, %v1512_v53 }
 0x33c   : > { %1576 = vst [vmem:[%s3002_s18 + $0xb0] sm:$0xff] %v1544_v32 }
 0x340   : > { %v1472_v58 = vpop.xlane.xlu1 %1471 }
 0x341   : > { %v1513_v60 = vsel %vm1489_vm1, %v1472_v58, 0.0 }
 0x342   : > { %v1545_v10 = vsel %vm1328_vm0, %v2938_v45, %v1513_v60  ;;  %v1474_v59 = vpop.xlane.xlu0 %1473 }
 0x343   : > { %1577 = vst [vmem:[%s3002_s18 + $0xb8] sm:$0xff] %v1545_v10  ;;  %v1514_v40 = vsel %vm1489_vm1, %v1474_v59, 0.0 }
 0x344   : > { %v1546_v36 = vsel %vm1328_vm0, %v2944_v52, %v1514_v40 }
 0x345   : > { %1578 = vst [vmem:[%s3002_s18 + $0xc0] sm:$0xff] %v1546_v36  ;;  %v1476_v18 = vpop.xlane.xlu1 %1475 }
 0x346   : > { %v1515_v48 = vsel %vm1489_vm1, %v1476_v18, 0.0 }
 0x347   : > { %v1547_v45 = vsel %vm1328_vm0, %v2950_v35, %v1515_v48 }
 0x348   : > { %1579 = vst [vmem:[%s3002_s18 + $0xc8] sm:$0xff] %v1547_v45 }
 0x349   : > { %v1478_v55 = vpop.xlane.xlu0 %1477 }
 0x34a   : > { %v1516_v28 = vsel %vm1489_vm1, %v1478_v55, 0.0 }
 0x34b   : > { %v1548_v52 = vsel %vm1328_vm0, %v2954_v20, %v1516_v28 }
 0x34c   : > { %1580 = vst [vmem:[%s3002_s18 + $0xd0] sm:$0xff] %v1548_v52 }
 0x34e   : > { %v1480_v4 = vpop.xlane.xlu1 %1479 }
 0x34f   : > { %v1517_v16 = vsel %vm1489_vm1, %v1480_v4, 0.0 }
 0x350   : > { %v1549_v35 = vsel %vm1328_vm0, %v2962_v19, %v1517_v16 }
 0x351   : > { %1581 = vst [vmem:[%s3002_s18 + $0xd8] sm:$0xff] %v1549_v35  ;;  %v1482_v15 = vpop.xlane.xlu0 %1481 }
 0x352   : > { %v1518_v57 = vsel %vm1489_vm1, %v1482_v15, 0.0 }
 0x353   : > { %v1550_v20 = vsel %vm1328_vm0, %v2968_v17, %v1518_v57 }
 0x354   : > { %1582 = vst [vmem:[%s3002_s18 + $0xe0] sm:$0xff] %v1550_v20 }
 0x355   : > { %v1484_v9 = vpop.xlane.xlu1 %1483 }
 0x356   : > { %v1519_v54 = vsel %vm1489_vm1, %v1484_v9, 0.0 }
 0x357   : > { %v1551_v19 = vsel %vm1328_vm0, %v2974_v43, %v1519_v54 }
 0x358   : > { %1583 = vst [vmem:[%s3002_s18 + $0xe8] sm:$0xff] %v1551_v19 }
 0x359   : > { %v1486_v37 = vpop.xlane.xlu0 %1485 }
 0x35a   : > { %v1520_v2 = vsel %vm1489_vm1, %v1486_v37, 0.0 }
 0x35b   : > { %v1552_v17 = vsel %vm1328_vm0, %v2978_v61, %v1520_v2 }
 0x35c   : > { %1584 = vst [vmem:[%s3002_s18 + $0xf0] sm:$0xff] %v1552_v17 }
 0x35d   : > { %v1488_v51 = vpop.xlane.xlu1 %1487 }
 0x35e   : > { %v1521_v43 = vsel %vm1489_vm1, %v1488_v51, 0.0 }
 0x35f   : > { %v1553_v5 = vsel %vm1328_vm0, %v2986_v13, %v1521_v43 }
 0x360   : > { %1585 = vst [vmem:[%s3002_s18 + $0xf8] sm:$0xff] %v1553_v5 }
 0x361   : > { %2349 = shalt.err (!%p2346_p1)
}
 0x362   : > { %s2350_s23 = scalar_lea.hbm %s3190_s22, 4096  ;;  %s2354_s28 = scalar_lea.hbm %s3245_s3, 8192 }
 0x363   : > { %p2351_p13 = scmp.ne.s32.totalorder %s3190_s22, %s2350_s23  ;;  %p2355_p4 = scmp.lt.u32.totalorder %s3190_s22, %s3245_s3 }
 0x364   : > { %p2356_p7 = scmp.lt.u32.totalorder %s2354_s28, %s2350_s23  ;;  %p2358_p11 = scmp.lt.u32.totalorder %s2350_s23, %s3190_s22 }
 0x365   : > { %p2352_p6 = pnand %p2351_p13, %p3259_p0 }
 0x366   : > { %p2357_p8 = por %p2356_p7, %p2355_p4 }
 0x367   : > { %p2353_p10 = pneg %p2352_p6 }
 0x368   : > { %p2359_p2 = por %p2358_p11, %p2357_p8 }
 0x36a   : > { %p2360_p3 = pnand %p2359_p2, %p2353_p10 }
 0x36c   : > { %2363 = shalt.err (!%p2360_p3)
}
 0x36d   : > { %s2417_s29 = smov 128   ;;  %s2418_s18 = smov 8  }
 0x36e   : > { %1962 = dma.vmem_to_hbm [thread:$0]  (%p3259_p0), %s3192_s7, 4096, %s3190_s22, %s1587_s16, %s2417_s29, %s2417_s29, %s2418_s18  }
 0x36f PF: > { %s1615_s20 = sand.u32 1, %s2394_s12   ;;  %p3260_p5 = scmp.ne.s32.totalorder %s3250_s19, 0 }
 0x370   : > { %p3261_p9 = scmp.ge.s32.totalorder %s2406_s15, 2  ;;  %s1616_s8 = scalar_lea.sflag [#allocation4], %s1615_s20 }
 0x372   : > { %p1976_p12 = pnand %p3261_p9, %p3260_p5 }
 0x374   : > { %2389 = dma.done.wait (!%p1976_p12), %s1616_s8, 4096  }
 0x375   : > { %2391 = vsyncadd (!%p1976_p12), %s1616_s8, 4294963200  ;;  %p17_p1 = scmp.ge.s32.totalorder %s2552_s6, 4   ;;  %s3262_s12 = smov %s2398_s13 }
 0x376   : > { %s3263_s13 = smov %s2402_s14  ;;  %s3264_s14 = smov %s2561_s11 }
 0x377   : > { %s3265_s15 = smov %s2552_s6  ;;  %19 = sbr.rel (!%p17_p1) target bundleno = 6 (0x6), region = 85 }
 0x37e   :  { %1621 = vsyncpa [#allocation3], 1 }
 0x37f   :  { %1623 = vsyncpa [#allocation3 + $0x1], 1 }
 0x380   :  { %1624 = vsyncpa [#allocation6], 1 }
 0x381   :  { %1625 = vsyncpa [#allocation4], 1 }
 0x382   :  { %1627 = vsyncpa [#allocation4 + $0x1], 1 }

</bundles_post_ra>
